<compile_context>
chip_gen: v6e
topology: v6e:2x2x1
jax: 0.10.0
libtpu: 0.0.40
codegen_flags: <defaults>
</compile_context>

<pallas_src>
import functools

import jax
import jax.numpy as jnp
from jax.experimental import pallas as pl
from jax.experimental.pallas import tpu as pltpu


def gmf_kernel(u_idx_ref, i_idx_ref,  # (8, 128) int32 index tiles (VMEM)
               table_ref,             # (6H, R_tot) bf16 stacked split tables (resident)
               w_ref,                 # (H, 1) f32 linear weight column (resident)
               b_ref,                 # (1,) f32 bias scalar (SMEM)
               out_ref):              # (8, 128) f32 lane-dense output tile
    sub, lanes = out_ref.shape
    tb = sub * lanes                       # examples per grid step
    h = w_ref.shape[0]
    r_tot = table_ref.shape[1]             # num_users + num_items

    # Flatten the (8, 128) index tiles into one lane-major row of TB examples.
    u_idx = u_idx_ref[...].reshape(1, tb)              # (1, TB)
    i_idx = i_idx_ref[...].reshape(1, tb)              # (1, TB), already offset by num_users

    # Combined "two-hot" selection matrix: column n has a 1 at row u_idx[n]
    # and a 1 at row num_users + i_idx[n].  0/1 is exact in bf16, and the
    # block-diagonal table layout guarantees each half only picks up its hit.
    rows = jax.lax.broadcasted_iota(jnp.int32, (r_tot, tb), 0)
    hit = (rows == u_idx) | (rows == i_idx)            # (R_tot, TB) bool
    sel = jnp.where(hit, 1.0, 0.0).astype(jnp.bfloat16)

    # Single bf16 MXU pass, f32 accumulation.  Rows of the result:
    #   [0:H]   user hi   [H:2H]  user mid   [2H:3H] user lo
    #   [3H:4H] item hi   [4H:5H] item mid   [5H:6H] item lo
    res = jnp.dot(table_ref[...], sel,
                  preferred_element_type=jnp.float32)  # (6H, TB)

    # Exact f32 reconstruction of the gathered embeddings (hi + mid + lo).
    u_cols = res[0 * h:1 * h] + res[1 * h:2 * h] + res[2 * h:3 * h]   # (H, TB)
    i_cols = res[3 * h:4 * h] + res[4 * h:5 * h] + res[5 * h:6 * h]   # (H, TB)

    # GMF: elementwise product; Linear(H, 1) fused as multiply + sublane reduce.
    weighted = u_cols * i_cols * w_ref[...]                            # (H, TB) VPU
    logits = jnp.sum(weighted, axis=0, keepdims=True) + b_ref[0]       # (1, TB)
    out_ref[...] = jax.nn.sigmoid(logits).reshape(sub, lanes).astype(out_ref.dtype)


def _split_bf16_3(x_f32):
    """Exact 3-way bf16 decomposition: hi + mid + lo == x (to f32 ulp)."""
    x = jnp.asarray(x_f32, jnp.float32)
    hi = x.astype(jnp.bfloat16)
    r1 = x - hi.astype(jnp.float32)
    mid = r1.astype(jnp.bfloat16)
    lo = (r1 - mid.astype(jnp.float32)).astype(jnp.bfloat16)
    return hi, mid, lo


def _stack_tables(user_emb, item_emb):
    """Block-diagonal bf16 operand of shape (6H, num_users + num_items)."""
    num_users, h = user_emb.shape
    num_items = item_emb.shape[0]
    u_parts = _split_bf16_3(user_emb)                  # each (num_users, H)
    i_parts = _split_bf16_3(item_emb)                  # each (num_items, H)
    u_block = jnp.concatenate([p.T for p in u_parts], axis=0)   # (3H, num_users)
    i_block = jnp.concatenate([p.T for p in i_parts], axis=0)   # (3H, num_items)
    top = jnp.concatenate(
        [u_block, jnp.zeros((3 * h, num_items), jnp.bfloat16)], axis=1)
    bot = jnp.concatenate(
        [jnp.zeros((3 * h, num_users), jnp.bfloat16), i_block], axis=1)
    return jnp.concatenate([top, bot], axis=0)         # (6H, R_tot)


@functools.partial(jax.jit, static_argnames=("tile_rows", "tile_lanes"))
def gmf_forward(user_indices, item_indices, user_emb, item_emb, w, b,
                *, tile_rows=8, tile_lanes=128):
    """user_indices, item_indices: (B,) int
       user_emb: (num_users, H), item_emb: (num_items, H)
       w: torch-Linear weight (1, H) (or (H,) / (H, 1)), b: (1,) bias
       returns (B, 1) float32 sigmoid(GMF logits)."""
    B = user_indices.shape[0]
    num_users, H = user_emb.shape
    num_items = item_emb.shape[0]
    r_tot = num_users + num_items

    tile = tile_rows * tile_lanes
    num_tiles = pl.cdiv(B, tile)
    pad = num_tiles * tile - B

    # Pad the batch and reshape to lane-dense (num_tiles * 8, 128) index slabs.
    # Item indices are pre-offset by num_users to address the stacked table.
    u_idx = jnp.pad(user_indices.astype(jnp.int32), (0, pad))
    i_idx = jnp.pad(item_indices.astype(jnp.int32) + num_users, (0, pad))
    u_idx = u_idx.reshape(num_tiles * tile_rows, tile_lanes)
    i_idx = i_idx.reshape(num_tiles * tile_rows, tile_lanes)

    # One-time layout plumbing outside the kernel.
    combined_table = _stack_tables(jnp.asarray(user_emb, jnp.float32),
                                   jnp.asarray(item_emb, jnp.float32))  # (6H, R_tot) bf16
    w_col = jnp.asarray(w, jnp.float32).reshape(H, 1)
    b_vec = jnp.asarray(b, jnp.float32).reshape(1)

    # Explicit VMEM budget: single-buffered table + per-step intermediates,
    # with headroom, capped below v7x's 64 MiB physical VMEM.
    table_bytes = int(combined_table.size) * 2
    step_bytes = (r_tot * tile * 2            # selection matrix (bf16)
                  + 6 * H * tile * 4          # matmul result (f32)
                  + 4 * H * tile * 4          # u_cols / i_cols / products (f32)
                  + 6 * tile * 4)             # index/output blocks
    vmem_limit = int(min(48 << 20, max(32 << 20,
                                       2 * (table_bytes + step_bytes) + (8 << 20))))

    resident = pl.Buffered(1)   # grid-invariant inputs: no double-buffering
    grid_spec = pltpu.PrefetchScalarGridSpec(
        num_scalar_prefetch=0,
        grid=(num_tiles,),
        in_specs=[
            pl.BlockSpec((tile_rows, tile_lanes), lambda t: (t, 0)),     # user idx tile
            pl.BlockSpec((tile_rows, tile_lanes), lambda t: (t, 0)),     # item idx tile
            pl.BlockSpec((6 * H, r_tot), lambda t: (0, 0),
                         pipeline_mode=resident),                        # stacked tables
            pl.BlockSpec((H, 1), lambda t: (0, 0),
                         pipeline_mode=resident),                        # linear weight
            pl.BlockSpec(memory_space=pltpu.MemorySpace.SMEM),           # bias scalar
        ],
        out_specs=pl.BlockSpec((tile_rows, tile_lanes), lambda t: (t, 0)),
    )

    out = pl.pallas_call(
        gmf_kernel,
        out_shape=jax.ShapeDtypeStruct((num_tiles * tile_rows, tile_lanes), jnp.float32),
        grid_spec=grid_spec,
        compiler_params=pltpu.CompilerParams(
            dimension_semantics=("parallel",),
            vmem_limit_bytes=vmem_limit),
    )(u_idx, i_idx, combined_table, w_col, b_vec)

    return out.reshape(-1)[:B].reshape(B, 1)


def reference_forward(user_indices, item_indices, user_emb, item_emb, w, b):
    ue = user_emb[user_indices]
    ie = item_emb[item_indices]
    prod = ue * ie
    logits = jnp.sum(prod * w.reshape(1, -1), axis=-1, keepdims=True) + b.reshape(1, 1)
    return jax.nn.sigmoid(logits)


if __name__ == "__main__":
    # config: small synthetic GMF
    num_users, num_items, hidden_dim = 16, 24, 32
    batch = 8

    key = jax.random.PRNGKey(0)
    k1, k2, k3, k4, k5, k6 = jax.random.split(key, 6)

    # deterministic parameter init (synthetic, not a checkpoint load)
    user_emb = jax.random.normal(k1, (num_users, hidden_dim), jnp.float32)
    item_emb = jax.random.normal(k2, (num_items, hidden_dim), jnp.float32)
    # torch.nn.Linear(hidden_dim, 1): weight (1, H), bias (1,)
    w = jax.random.normal(k3, (1, hidden_dim), jnp.float32) * 0.1
    b = jax.random.normal(k4, (1,), jnp.float32) * 0.1

    user_indices = jax.random.randint(k5, (batch,), 0, num_users, jnp.int32)
    item_indices = jax.random.randint(k6, (batch,), 0, num_items, jnp.int32)

    out = gmf_forward(user_indices, item_indices, user_emb, item_emb, w, b)
    out = jax.block_until_ready(out)

    ref = reference_forward(user_indices, item_indices, user_emb, item_emb, w, b)
    assert out.shape == (batch, 1), out.shape
    assert jnp.allclose(out, ref, atol=1e-5, rtol=1e-5), (out, ref)

    print("KERNEL_OK")
</pallas_src>

<mosaic_0001>
module attributes {stable_mosaic.version = 11 : i64} {
  func.func @gmf_kernel(%arg0: i32, %arg1: memref<8x128xi32, #tpu.memory_space<vmem>>, %arg2: memref<8x128xi32, #tpu.memory_space<vmem>>, %arg3: memref<192x40xbf16, #tpu.memory_space<vmem>>, %arg4: memref<32x1xf32, #tpu.memory_space<vmem>>, %arg5: memref<1xf32, #tpu.memory_space<smem>>, %arg6: memref<8x128xf32, #tpu.memory_space<vmem>>) attributes {dimension_semantics = [#tpu.dimension_semantics<parallel>], iteration_bounds = array<i64: 1>, scalar_prefetch = 0 : i64, scratch_operands = 0 : i64, tpu.core_type = #tpu.core_type<tc>, window_params = [{transform_indices = @transform_0, window_bounds = array<i64: 8, 128>}, {transform_indices = @transform_1, window_bounds = array<i64: 8, 128>}, {pipeline_mode = #tpu.pipeline_mode<synchronous>, transform_indices = @transform_2, window_bounds = array<i64: 192, 40>}, {pipeline_mode = #tpu.pipeline_mode<synchronous>, transform_indices = @transform_3, window_bounds = array<i64: 32, 1>}, {transform_indices = @transform_4, window_bounds = array<i64: 1>}, {transform_indices = @transform_5, window_bounds = array<i64: 8, 128>}]} {
    %c0 = arith.constant 0 : index
    %c0_0 = arith.constant 0 : index
    %0 = vector.load %arg1[%c0, %c0_0] : memref<8x128xi32, #tpu.memory_space<vmem>>, vector<8x128xi32>
    %1 = vector.shape_cast %0 : vector<8x128xi32> to vector<1x1024xi32>
    %c0_1 = arith.constant 0 : index
    %c0_2 = arith.constant 0 : index
    %2 = vector.load %arg2[%c0_1, %c0_2] : memref<8x128xi32, #tpu.memory_space<vmem>>, vector<8x128xi32>
    %3 = vector.shape_cast %2 : vector<8x128xi32> to vector<1x1024xi32>
    %4 = tpu.iota {dimensions = array<i32: 0>} : vector<40x1024xi32>
    %5 = vector.broadcast %1 : vector<1x1024xi32> to vector<40x1024xi32>
    %6 = arith.cmpi eq, %4, %5 : vector<40x1024xi32>
    %7 = vector.broadcast %3 : vector<1x1024xi32> to vector<40x1024xi32>
    %8 = arith.cmpi eq, %4, %7 : vector<40x1024xi32>
    %9 = arith.ori %6, %8 : vector<40x1024xi1>
    %cst = arith.constant 1.000000e+00 : f32
    %cst_3 = arith.constant 0.000000e+00 : f32
    %10 = vector.broadcast %cst : f32 to vector<40x1024xf32>
    %11 = vector.broadcast %cst_3 : f32 to vector<40x1024xf32>
    %12 = arith.select %9, %10, %11 : vector<40x1024xi1>, vector<40x1024xf32>
    %13 = arith.truncf %12 : vector<40x1024xf32> to vector<40x1024xbf16>
    %c0_4 = arith.constant 0 : index
    %c0_5 = arith.constant 0 : index
    %14 = vector.load %arg3[%c0_4, %c0_5] : memref<192x40xbf16, #tpu.memory_space<vmem>>, vector<192x40xbf16>
    %cst_6 = arith.constant dense<0.000000e+00> : vector<192x1024xf32>
    %15 = tpu.matmul %14, %13, %cst_6 {dimension_numbers = #tpu.dot_dimension_numbers<[1], [0], [0], [1], [0, 0, 1, 1], [], []>} : vector<192x40xbf16>, vector<40x1024xbf16>, vector<192x1024xf32> -> vector<192x1024xf32>
    %16 = vector.extract_strided_slice %15 {offsets = [0, 0], sizes = [32, 1024], strides = [1, 1]} : vector<192x1024xf32> to vector<32x1024xf32>
    %17 = vector.extract_strided_slice %15 {offsets = [32, 0], sizes = [32, 1024], strides = [1, 1]} : vector<192x1024xf32> to vector<32x1024xf32>
    %18 = arith.addf %16, %17 : vector<32x1024xf32>
    %19 = vector.extract_strided_slice %15 {offsets = [64, 0], sizes = [32, 1024], strides = [1, 1]} : vector<192x1024xf32> to vector<32x1024xf32>
    %20 = arith.addf %18, %19 : vector<32x1024xf32>
    %21 = vector.extract_strided_slice %15 {offsets = [96, 0], sizes = [32, 1024], strides = [1, 1]} : vector<192x1024xf32> to vector<32x1024xf32>
    %22 = vector.extract_strided_slice %15 {offsets = [128, 0], sizes = [32, 1024], strides = [1, 1]} : vector<192x1024xf32> to vector<32x1024xf32>
    %23 = arith.addf %21, %22 : vector<32x1024xf32>
    %24 = vector.extract_strided_slice %15 {offsets = [160, 0], sizes = [32, 1024], strides = [1, 1]} : vector<192x1024xf32> to vector<32x1024xf32>
    %25 = arith.addf %23, %24 : vector<32x1024xf32>
    %26 = arith.mulf %20, %25 : vector<32x1024xf32>
    %c0_7 = arith.constant 0 : index
    %c0_8 = arith.constant 0 : index
    %27 = vector.load %arg4[%c0_7, %c0_8] : memref<32x1xf32, #tpu.memory_space<vmem>>, vector<32x1xf32>
    %28 = vector.broadcast %27 : vector<32x1xf32> to vector<32x1024xf32>
    %29 = arith.mulf %26, %28 : vector<32x1024xf32>
    %cst_9 = arith.constant dense<0.000000e+00> : vector<1024xf32>
    %30 = vector.multi_reduction <add>, %29, %cst_9 [0] : vector<32x1024xf32> to vector<1024xf32>
    %31 = vector.shape_cast %30 : vector<1024xf32> to vector<1x1024xf32>
    %c0_10 = arith.constant 0 : index
    %32 = memref.load %arg5[%c0_10] : memref<1xf32, #tpu.memory_space<smem>>
    %33 = vector.broadcast %32 : f32 to vector<1x1024xf32>
    %34 = arith.addf %31, %33 : vector<1x1024xf32>
    %35 = arith.negf %34 : vector<1x1024xf32>
    %36 = math.exp %35 : vector<1x1024xf32>
    %cst_11 = arith.constant 1.000000e+00 : f32
    %37 = vector.broadcast %cst_11 : f32 to vector<1x1024xf32>
    %38 = arith.addf %37, %36 : vector<1x1024xf32>
    %39 = arith.divf %37, %38 : vector<1x1024xf32>
    %40 = vector.shape_cast %39 : vector<1x1024xf32> to vector<8x128xf32>
    %c0_12 = arith.constant 0 : index
    %c0_13 = arith.constant 0 : index
    %41 = vector.load %arg6[%c0_12, %c0_13] : memref<8x128xf32, #tpu.memory_space<vmem>>, vector<8x128xf32>
    tpu.vector_store %arg6[%c0_12, %c0_13], %40 {strides = array<i32>} : memref<8x128xf32, #tpu.memory_space<vmem>>, vector<8x128xf32>,
    return
  }
  func.func @transform_0(%arg0: i32) -> (i32, i32) {
    %c0_i32 = arith.constant 0 : i32
    %c0_i32_0 = arith.constant 0 : i32
    return %arg0, %c0_i32 : i32, i32
  }
  func.func @transform_1(%arg0: i32) -> (i32, i32) {
    %c0_i32 = arith.constant 0 : i32
    %c0_i32_0 = arith.constant 0 : i32
    return %arg0, %c0_i32 : i32, i32
  }
  func.func @transform_2(%arg0: i32) -> (i32, i32) {
    %c0_i32 = arith.constant 0 : i32
    %c0_i32_0 = arith.constant 0 : i32
    %c0_i32_1 = arith.constant 0 : i32
    return %c0_i32, %c0_i32_0 : i32, i32
  }
  func.func @transform_3(%arg0: i32) -> (i32, i32) {
    %c0_i32 = arith.constant 0 : i32
    %c0_i32_0 = arith.constant 0 : i32
    %c0_i32_1 = arith.constant 0 : i32
    return %c0_i32, %c0_i32_0 : i32, i32
  }
  func.func @transform_4(%arg0: i32) -> i32 {
    %c0_i32 = arith.constant 0 : i32
    %c0_i32_0 = arith.constant 0 : i32
    return %c0_i32 : i32
  }
  func.func @transform_5(%arg0: i32) -> (i32, i32) {
    %c0_i32 = arith.constant 0 : i32
    %c0_i32_0 = arith.constant 0 : i32
    return %arg0, %c0_i32 : i32, i32
  }
}

</mosaic_0001>

<bundles_post_ra>
// kernel: gmf_forward.1
= control target key start
LH: loop header
LB: loop body
LE: loop exit
PB: predicated region body
PF: predicated region fallthrough
CT: control target
= control target key end

     0   :  { %v52_v0 = vlaneseq  ;;  %vm427_vm0 = vcmask 1043456   ;;  %v1619_v7 = vmov 0   ;;  %v1620_v22 = vmov 0.0   ;;  %s2468_s0 = inlined_call_operand.vmem [shape: s32[8,128], index: 0, kind: input, shape index: {}]   ;;  %s2469_s1 = inlined_call_operand.vmem [shape: s32[8,128], index: 1, kind: input, shape index: {}]   ;;  %s2470_s2 = inlined_call_operand.vmem [shape: bf16[192,40], index: 2, kind: input, shape index: {}]   ;;  %s2471_s3 = inlined_call_operand.vmem [shape: f32[32,1], index: 3, kind: input, shape index: {}]   ;;  %s2472_s4 = inlined_call_operand.<no memory space> [shape: f32[1], index: 4, kind: input, shape index: {}]   ;;  %s2473_s5 = inlined_call_operand.vmem [shape: f32[8,128], index: 5, kind: output, shape index: {}]  }
   0x1   :  { %v1445_v1 = vld [vmem:[%s2468_s0 + $0x1] ss:$8 sm:$0x1]  ;;  %v1447_v4 = vld [vmem:[%s2468_s0 + $0x3] ss:$8 sm:$0x1]  ;;  %484 = vmatprep.mubr.bf16.mxu0 %v1619_v7  ;;  %637 = vmatprep.mubr.bf16.mxu1 %v1619_v7 }
   0x2   :  { %v1452_v2 = vld [vmem:[%s2469_s1 + $0x1] ss:$8 sm:$0x1]  ;;  %v1658_v3 = vshrl.u32 %v52_v0, 7  ;;  %1573 = vset.pattern.permute.xlu0 %v1619_v7  ;;  %1574 = vset.pattern.permute.xlu1 %v1619_v7  ;;  %v1621_v35 = vmov 1.0|1.0  }
   0x3   :  { %v1454_v5 = vld [vmem:[%s2469_s1 + $0x3] ss:$8 sm:$0x1]  ;;  %v22_v6 = vld [vmem:[%s2468_s0] ss:$8 sm:$0x1] }
   0x4   :  { %v1672_v8 = vadd.s32 32, %v1658_v3  ;;  %v1675_v9 = vsub.s32 0, %v1658_v3  ;;  %v37_v10 = vld [vmem:[%s2469_s1] ss:$8 sm:$0x1]  ;;  %v1681_v11 = vadd.s32 16, %v1658_v3 }
   0x5   :  { %v1446_v12 = vld [vmem:[%s2468_s0 + $0x2] ss:$8 sm:$0x1]  ;;  %v1733_v24 = vadd.s32 24, %v1658_v3  ;;  %v1779_v36 = vadd.s32 8, %v1658_v3  ;;  %v1929_v62 = vld [vmem:[%s2470_s2 + $0x8] sm:$0xff]  }
   0x6   :  { %v1453_v13 = vld [vmem:[%s2469_s1 + $0x2] ss:$8 sm:$0x1]  ;;  %v1692_v14 = vrot.slane %v1445_v1, %v1675_v9  ;;  %v1695_v15 = vrot.slane %v1452_v2, %v1675_v9  ;;  %v1698_v16 = vrot.slane %v1447_v4, %v1675_v9  ;;  %v1701_v17 = vrot.slane %v1454_v5, %v1675_v9  ;;  %v1449_v37 = vld [vmem:[%s2468_s0 + $0x5] ss:$8 sm:$0x1] }
   0x7   :  { %v1704_v18 = vrot.slane %v22_v6, %v1675_v9  ;;  %v1707_v19 = vrot.slane %v37_v10, %v1675_v9  ;;  %v1710_v20 = vrot.slane %v1446_v12, %v1675_v9  ;;  %v1713_v21 = vrot.slane %v1453_v13, %v1675_v9  ;;  %v1456_v38 = vld [vmem:[%s2469_s1 + $0x5] ss:$8 sm:$0x1]  ;;  %v1451_v40 = vld [vmem:[%s2468_s0 + $0x7] ss:$8 sm:$0x1] }
   0x8   :  { %vm123_vm1 = vcmp.eq.s32.totalorder %v1672_v8, %v1692_v14  ;;  %vm195_vm2 = vcmp.eq.s32.totalorder %v1672_v8, %v1695_v15  ;;  %vm125_vm3 = vcmp.eq.s32.totalorder %v1672_v8, %v1698_v16  ;;  %vm197_vm4 = vcmp.eq.s32.totalorder %v1672_v8, %v1701_v17  ;;  %v1458_v41 = vld [vmem:[%s2469_s1 + $0x7] ss:$8 sm:$0x1]  ;;  %v1448_v42 = vld [vmem:[%s2468_s0 + $0x4] ss:$8 sm:$0x1] }
   0x9   :  { %vm235_vm5 = vmor %vm123_vm1, %vm195_vm2  ;;  %vm122_vm6 = vcmp.eq.s32.totalorder %v1672_v8, %v1704_v18  ;;  %vm194_vm7 = vcmp.eq.s32.totalorder %v1672_v8, %v1707_v19  ;;  %vm124_vm8 = vcmp.eq.s32.totalorder %v1672_v8, %v1710_v20  ;;  %vm196_vm9 = vcmp.eq.s32.totalorder %v1672_v8, %v1713_v21  ;;  %v1455_v43 = vld [vmem:[%s2469_s1 + $0x4] ss:$8 sm:$0x1]  ;;  %v1450_v46 = vld [vmem:[%s2468_s0 + $0x6] ss:$8 sm:$0x1] }
   0xa   :  { %v275_v23 = vsel %vm235_vm5, 1.0, %v1620_v22  ;;  %vm237_vm10 = vmor %vm125_vm3, %vm197_vm4  ;;  %vm107_vm11 = vcmp.eq.s32.totalorder %v1681_v11, %v1692_v14  ;;  %vm179_vm12 = vcmp.eq.s32.totalorder %v1681_v11, %v1695_v15  ;;  %vm115_vm15 = vcmp.eq.s32.totalorder %v1733_v24, %v1692_v14  ;;  %v1457_v47 = vld [vmem:[%s2469_s1 + $0x6] ss:$8 sm:$0x1]  ;;  %v1993_v5 = vld [vmem:[%s2470_s2 + $0x10] sm:$0xff]  }
   0xb   :  { %v299_v25 = vpack.c.bf16 %v275_v23, %v275_v23  ;;  %v277_v26 = vsel %vm237_vm10, 1.0, %v1620_v22  ;;  %vm234_vm13 = vmor %vm122_vm6, %vm194_vm7  ;;  %vm187_vm1 = vcmp.eq.s32.totalorder %v1733_v24, %v1695_v15  ;;  %vm109_vm3 = vcmp.eq.s32.totalorder %v1681_v11, %v1698_v16  ;;  %v1878_v52 = vld [vmem:[%s2470_s2] sm:$0xff]   ;;  %v2027_v6 = vld [vmem:[%s2470_s2 + $0x18] sm:$0xff]  }
   0xc   :  { %v301_v27 = vpack.c.bf16 %v277_v26, %v277_v26  ;;  %v274_v28 = vsel %vm234_vm13, 1.0, %v1620_v22  ;;  %vm236_vm14 = vmor %vm124_vm8, %vm196_vm9  ;;  %vm181_vm4 = vcmp.eq.s32.totalorder %v1681_v11, %v1701_v17  ;;  %vm117_vm6 = vcmp.eq.s32.totalorder %v1733_v24, %v1698_v16  ;;  %v1226_v10 = vld [vmem:[%s2471_s3 + $0x10] sm:$0xff]  ;;  %v1227_v12 = vld [vmem:[%s2471_s3 + $0x18] sm:$0xff] }
   0xd   :  { %1471 = vmatprep.subr.msk.bf16.mxu0 %vm427_vm0, %v299_v25  ;;  %v298_v29 = vpack.c.bf16 %v274_v28, %v274_v28  ;;  %v276_v30 = vsel %vm236_vm14, 1.0, %v1620_v22  ;;  %vm1747_vm2 = vmor %vm107_vm11, %vm179_vm12  ;;  %vm189_vm7 = vcmp.eq.s32.totalorder %v1733_v24, %v1701_v17  ;;  %vm106_vm10 = vcmp.eq.s32.totalorder %v1681_v11, %v1704_v18  ;;  %1240 = vperm.xlu1 %1574, %v1226_v10   ;;  %v1581_v13 = vld [vmem:[%s2470_s2 + $0x30] sm:$0xff]  }
   0xe   :  { %1492 = vmatprep.subr.msk.bf16.mxu1 %vm427_vm0, %v301_v27  ;;  %v300_v32 = vpack.c.bf16 %v276_v30, %v276_v30  ;;  %vm227_vm5 = vmor %vm115_vm15, %vm187_vm1  ;;  %vm178_vm11 = vcmp.eq.s32.totalorder %v1681_v11, %v1707_v19  ;;  %vm114_vm13 = vcmp.eq.s32.totalorder %v1733_v24, %v1704_v18  ;;  %vm186_vm14 = vcmp.eq.s32.totalorder %v1733_v24, %v1707_v19 }
   0xf   :  { %v429_v33 = vsel %vm427_vm0, %v298_v29, 0  ;;  %vm1472_vm8 = vmpackc.low %vm227_vm5, %vm1747_vm2  ;;  %vm108_vm2 = vcmp.eq.s32.totalorder %v1681_v11, %v1710_v20  ;;  %vm116_vm5 = vcmp.eq.s32.totalorder %v1733_v24, %v1710_v20  ;;  %v1837_v44 = vrot.slane %v1449_v37, %v1675_v9 }
  0x10   :  { %463 = vmatpush1.bf16.msra.mxu0 %v429_v33  ;;  %v435_v34 = vsel %vm427_vm0, %v300_v32, 0  ;;  %vm221_vm9 = vmor %vm109_vm3, %vm181_vm4  ;;  %vm180_vm3 = vcmp.eq.s32.totalorder %v1681_v11, %v1713_v21  ;;  %v1840_v45 = vrot.slane %v1456_v38, %v1675_v9  ;;  %v1857_v48 = vrot.slane %v1451_v40, %v1675_v9 }
  0x11   :  { %616 = vmatpush1.bf16.msra.mxu1 %v435_v34  ;;  %1473 = vmatprep.subr.msk.bf16.mxu0 %vm1472_vm8, %v1621_v35  ;;  %vm229_vm12 = vmor %vm117_vm6, %vm189_vm7  ;;  %vm188_vm6 = vcmp.eq.s32.totalorder %v1733_v24, %v1713_v21  ;;  %v1860_v49 = vrot.slane %v1458_v41, %v1675_v9  ;;  %v1870_v50 = vrot.slane %v1448_v42, %v1675_v9 }
  0x12   :  { %vm1493_vm15 = vmpackc.low %vm229_vm12, %vm221_vm9  ;;  %vm91_vm9 = vcmp.eq.s32.totalorder %v1658_v3, %v1692_v14  ;;  %vm99_vm12 = vcmp.eq.s32.totalorder %v1779_v36, %v1692_v14  ;;  %v1873_v51 = vrot.slane %v1455_v43, %v1675_v9  ;;  %v1881_v53 = vrot.slane %v1450_v46, %v1675_v9  ;;  %1245 = vperm.xlu1 %1574, %v1227_v12   ;;  %v1582_v14 = vld [vmem:[%s2470_s2 + $0x38] sm:$0xff]  }
  0x13   :  { %1494 = vmatprep.subr.msk.bf16.mxu1 %vm1493_vm15, %v1621_v35  ;;  %vm218_vm1 = vmor %vm106_vm10, %vm178_vm11  ;;  %vm163_vm10 = vcmp.eq.s32.totalorder %v1658_v3, %v1695_v15  ;;  %v1884_v54 = vrot.slane %v1457_v47, %v1675_v9  ;;  %v1225_v9 = vld [vmem:[%s2471_s3 + $0x8] sm:$0xff] }
  0x14   :  { %vm226_vm4 = vmor %vm114_vm13, %vm186_vm14  ;;  %vm171_vm13 = vcmp.eq.s32.totalorder %v1779_v36, %v1695_v15  ;;  %v1583_v15 = vld [vmem:[%s2470_s2 + $0x40] sm:$0xff]  }
  0x15   :  { %vm1474_vm7 = vmpackc.low %vm226_vm4, %vm218_vm1  ;;  %vm93_vm1 = vcmp.eq.s32.totalorder %v1658_v3, %v1698_v16  ;;  %vm101_vm4 = vcmp.eq.s32.totalorder %v1779_v36, %v1698_v16  ;;  %v1584_v16 = vld [vmem:[%s2470_s2 + $0x48] sm:$0xff]  }
  0x16   :  { %1475 = vmatpush1.bf16.msk.msra.mxu0 %vm1474_vm7, %v1621_v35  ;;  %vm220_vm8 = vmor %vm108_vm2, %vm180_vm3  ;;  %vm165_vm2 = vcmp.eq.s32.totalorder %v1658_v3, %v1701_v17 }
  0x17   :  { %vm228_vm11 = vmor %vm116_vm5, %vm188_vm6  ;;  %vm173_vm5 = vcmp.eq.s32.totalorder %v1779_v36, %v1701_v17  ;;  %v1585_v17 = vld [vmem:[%s2470_s2 + $0x50] sm:$0xff]  }
  0x18   :  { %vm1495_vm14 = vmpackc.low %vm228_vm11, %vm220_vm8  ;;  %vm90_vm8 = vcmp.eq.s32.totalorder %v1658_v3, %v1704_v18  ;;  %vm98_vm11 = vcmp.eq.s32.totalorder %v1779_v36, %v1704_v18  ;;  %v1586_v18 = vld [vmem:[%s2470_s2 + $0x58] sm:$0xff]  }
  0x19   :  { %1496 = vmatpush1.bf16.msk.msra.mxu1 %vm1495_vm14, %v1621_v35  ;;  %vm203_vm15 = vmor %vm91_vm9, %vm163_vm10  ;;  %vm162_vm9 = vcmp.eq.s32.totalorder %v1658_v3, %v1707_v19 }
  0x1a   :  { %vm211_vm3 = vmor %vm99_vm12, %vm171_vm13  ;;  %vm170_vm12 = vcmp.eq.s32.totalorder %v1779_v36, %v1707_v19 }
  0x1b   :  { %vm1476_vm6 = vmpackc.low %vm211_vm3, %vm203_vm15  ;;  %vm92_vm15 = vcmp.eq.s32.totalorder %v1658_v3, %v1710_v20  ;;  %vm100_vm3 = vcmp.eq.s32.totalorder %v1779_v36, %v1710_v20 }
  0x1c   :  { %1477 = vmatprep.subr.msk.bf16.mxu0 %vm1476_vm6, %v1621_v35  ;;  %vm1810_vm7 = vmor %vm93_vm1, %vm165_vm2  ;;  %vm164_vm1 = vcmp.eq.s32.totalorder %v1658_v3, %v1713_v21 }
  0x1d   :  { %vm213_vm10 = vmor %vm101_vm4, %vm173_vm5  ;;  %vm172_vm4 = vcmp.eq.s32.totalorder %v1779_v36, %v1713_v21 }
  0x1e   :  { %vm1497_vm13 = vmpackc.low %vm213_vm10, %vm1810_vm7  ;;  %vm390_vm7 = vcmask 326656  }
  0x1f   :  { %1498 = vmatprep.subr.msk.bf16.mxu1 %vm1497_vm13, %v1621_v35  ;;  %vm202_vm14 = vmor %vm90_vm8, %vm162_vm9  ;;  %vm127_vm8 = vcmp.eq.s32.totalorder %v1672_v8, %v1837_v44  ;;  %vm199_vm9 = vcmp.eq.s32.totalorder %v1672_v8, %v1840_v45 }
  0x20   :  { %vm210_vm2 = vmor %vm98_vm11, %vm170_vm12  ;;  %vm129_vm11 = vcmp.eq.s32.totalorder %v1672_v8, %v1857_v48  ;;  %vm201_vm12 = vcmp.eq.s32.totalorder %v1672_v8, %v1860_v49 }
  0x21   :  { %vm1478_vm5 = vmpackc.low %vm210_vm2, %vm202_vm14  ;;  %vm126_vm14 = vcmp.eq.s32.totalorder %v1672_v8, %v1870_v50  ;;  %vm128_vm2 = vcmp.eq.s32.totalorder %v1672_v8, %v1881_v53 }
  0x22   :  { %1479 = vmatpush1.bf16.msk.msra.mxu0 %vm1478_vm5, %v1621_v35  ;;  %vm204_vm6 = vmor %vm92_vm15, %vm164_vm1  ;;  %vm198_vm15 = vcmp.eq.s32.totalorder %v1672_v8, %v1873_v51  ;;  %vm111_vm5 = vcmp.eq.s32.totalorder %v1681_v11, %v1837_v44 }
  0x23   :  { %vm212_vm10 = vmor %vm100_vm3, %vm172_vm4  ;;  %vm200_vm3 = vcmp.eq.s32.totalorder %v1672_v8, %v1884_v54  ;;  %v2055_v8 = vld [vmem:[%s2470_s2 + $0x20] sm:$0xff]  }
  0x24   :  { %vm1499_vm13 = vmpackc.low %vm212_vm10, %vm204_vm6  ;;  %vm183_vm6 = vcmp.eq.s32.totalorder %v1681_v11, %v1840_v45  ;;  %vm191_vm10 = vcmp.eq.s32.totalorder %v1733_v24, %v1840_v45 }
  0x25   :  { %1500 = vmatpush1.bf16.msk.msra.mxu1 %vm1499_vm13, %v1621_v35  ;;  %1480 = vmatmul.mubr.msk.bf16.vlgmr.msra.gmra.mxu0 %vm390_vm7, %v1878_v52  ;;  %vm239_vm1 = vmor %vm127_vm8, %vm199_vm9  ;;  %vm119_vm9 = vcmp.eq.s32.totalorder %v1733_v24, %v1837_v44  ;;  %vm113_vm13 = vcmp.eq.s32.totalorder %v1681_v11, %v1857_v48 }
  0x26   :  { %v279_v55 = vsel %vm239_vm1, 1.0, %v1620_v22  ;;  %vm241_vm4 = vmor %vm129_vm11, %vm201_vm12  ;;  %494 = vmatprep.mubr.bf16.mxu0 %v1619_v7  ;;  %vm121_vm1 = vcmp.eq.s32.totalorder %v1733_v24, %v1857_v48 }
  0x27   :  { %v303_v56 = vpack.c.bf16 %v279_v55, %v279_v55  ;;  %v281_v57 = vsel %vm241_vm4, 1.0, %v1620_v22  ;;  %vm238_vm8 = vmor %vm126_vm14, %vm198_vm15  ;;  %vm185_vm14 = vcmp.eq.s32.totalorder %v1681_v11, %v1860_v49 }
  0x28   :  { %1501 = vmatmul.mubr.msk.bf16.vlgmr.msra.gmra.mxu1 %vm390_vm7, %v1878_v52  ;;  %v305_v58 = vpack.c.bf16 %v281_v57, %v281_v57  ;;  %v278_v59 = vsel %vm238_vm8, 1.0, %v1620_v22  ;;  %vm240_vm11 = vmor %vm128_vm2, %vm200_vm3  ;;  %vm193_vm2 = vcmp.eq.s32.totalorder %v1733_v24, %v1860_v49 }
  0x29   :  { %1513 = vmatprep.subr.msk.bf16.mxu0 %vm427_vm0, %v303_v56  ;;  %v302_v60 = vpack.c.bf16 %v278_v59, %v278_v59  ;;  %v280_v61 = vsel %vm240_vm11, 1.0, %v1620_v22  ;;  %647 = vmatprep.mubr.bf16.mxu1 %v1619_v7  ;;  %vm1937_vm12 = vmor %vm111_vm5, %vm183_vm6  ;;  %vm110_vm5 = vcmp.eq.s32.totalorder %v1681_v11, %v1870_v50  ;;  %vm182_vm6 = vcmp.eq.s32.totalorder %v1681_v11, %v1873_v51 }
  0x2a   :  { %1534 = vmatprep.subr.msk.bf16.mxu1 %vm427_vm0, %v305_v58  ;;  %v304_v0 = vpack.c.bf16 %v280_v61, %v280_v61  ;;  %vm1952_vm15 = vmor %vm119_vm9, %vm191_vm10  ;;  %vm118_vm9 = vcmp.eq.s32.totalorder %v1733_v24, %v1870_v50  ;;  %vm190_vm10 = vcmp.eq.s32.totalorder %v1733_v24, %v1873_v51 }
  0x2b   :  { %v441_v2 = vsel %vm427_vm0, %v302_v60, 0  ;;  %vm1514_vm3 = vmpackc.low %vm1952_vm15, %vm1937_vm12  ;;  %vm112_vm12 = vcmp.eq.s32.totalorder %v1681_v11, %v1881_v53  ;;  %vm120_vm15 = vcmp.eq.s32.totalorder %v1733_v24, %v1881_v53 }
  0x2c   :  { %769 = vmatpush1.bf16.msra.mxu0 %v441_v2  ;;  %v447_v4 = vsel %vm427_vm0, %v304_v0, 0  ;;  %vm225_vm4 = vmor %vm113_vm13, %vm185_vm14  ;;  %vm184_vm13 = vcmp.eq.s32.totalorder %v1681_v11, %v1884_v54  ;;  %v1580_v11 = vld [vmem:[%s2470_s2 + $0x28] sm:$0xff]  }
  0x2d   :  { %922 = vmatpush1.bf16.msra.mxu1 %v447_v4  ;;  %1481 = vmatmul.mubr.msk.bf16.gmra.mxu0 %vm390_vm7, %v1929_v62  ;;  %vm233_vm8 = vmor %vm121_vm1, %vm193_vm2  ;;  %vm192_vm1 = vcmp.eq.s32.totalorder %v1733_v24, %v1884_v54 }
  0x2e   :  { %504 = vmatprep.mubr.bf16.mxu0 %v1619_v7  ;;  %1515 = vmatprep.subr.msk.bf16.mxu0 %vm1514_vm3, %v1621_v35  ;;  %vm1535_vm0 = vmpackc.low %vm233_vm8, %vm225_vm4  ;;  %vm95_vm4 = vcmp.eq.s32.totalorder %v1658_v3, %v1837_v44  ;;  %vm103_vm8 = vcmp.eq.s32.totalorder %v1779_v36, %v1837_v44 }
  0x2f   :  { %1536 = vmatprep.subr.msk.bf16.mxu1 %vm1535_vm0, %v1621_v35  ;;  %vm222_vm11 = vmor %vm110_vm5, %vm182_vm6  ;;  %vm167_vm5 = vcmp.eq.s32.totalorder %v1658_v3, %v1840_v45 }
  0x30   :  { %1502 = vmatmul.mubr.msk.bf16.gmra.mxu1 %vm390_vm7, %v1929_v62  ;;  %vm230_vm14 = vmor %vm118_vm9, %vm190_vm10  ;;  %vm175_vm9 = vcmp.eq.s32.totalorder %v1779_v36, %v1840_v45 }
  0x31   :  { %657 = vmatprep.mubr.bf16.mxu1 %v1619_v7  ;;  %vm1516_vm2 = vmpackc.low %vm230_vm14, %vm222_vm11  ;;  %vm97_vm11 = vcmp.eq.s32.totalorder %v1658_v3, %v1857_v48  ;;  %vm105_vm14 = vcmp.eq.s32.totalorder %v1779_v36, %v1857_v48 }
  0x32   :  { %1517 = vmatpush1.bf16.msk.msra.mxu0 %vm1516_vm2, %v1621_v35  ;;  %vm224_vm3 = vmor %vm112_vm12, %vm184_vm13  ;;  %vm169_vm12 = vcmp.eq.s32.totalorder %v1658_v3, %v1860_v49 }
  0x33   :  { %vm232_vm6 = vmor %vm120_vm15, %vm192_vm1  ;;  %vm177_vm15 = vcmp.eq.s32.totalorder %v1779_v36, %v1860_v49 }
  0x34   :  { %vm1537_vm10 = vmpackc.low %vm232_vm6, %vm224_vm3  ;;  %vm94_vm3 = vcmp.eq.s32.totalorder %v1658_v3, %v1870_v50  ;;  %vm102_vm6 = vcmp.eq.s32.totalorder %v1779_v36, %v1870_v50 }
  0x35   :  { %1482 = vmatmul.mubr.msk.bf16.gmra.mxu0 %vm390_vm7, %v1993_v5  ;;  %1538 = vmatpush1.bf16.msk.msra.mxu1 %vm1537_vm10, %v1621_v35  ;;  %vm207_vm0 = vmor %vm95_vm4, %vm167_vm5  ;;  %vm166_vm4 = vcmp.eq.s32.totalorder %v1658_v3, %v1873_v51 }
  0x36   :  { %514 = vmatprep.mubr.bf16.mxu0 %v1619_v7  ;;  %vm215_vm13 = vmor %vm103_vm8, %vm175_vm9  ;;  %vm174_vm8 = vcmp.eq.s32.totalorder %v1779_v36, %v1873_v51 }
  0x37   :  { %vm1518_vm1 = vmpackc.low %vm215_vm13, %vm207_vm0  ;;  %vm96_vm0 = vcmp.eq.s32.totalorder %v1658_v3, %v1881_v53  ;;  %vm104_vm13 = vcmp.eq.s32.totalorder %v1779_v36, %v1881_v53 }
  0x38   :  { %1503 = vmatmul.mubr.msk.bf16.gmra.mxu1 %vm390_vm7, %v1993_v5  ;;  %1519 = vmatprep.subr.msk.bf16.mxu0 %vm1518_vm1, %v1621_v35  ;;  %vm209_vm2 = vmor %vm97_vm11, %vm169_vm12  ;;  %vm168_vm11 = vcmp.eq.s32.totalorder %v1658_v3, %v1884_v54  ;;  %v1224_v3 = vld [vmem:[%s2471_s3] sm:$0xff] }
  0x39   :  { %667 = vmatprep.mubr.bf16.mxu1 %v1619_v7  ;;  %vm217_vm5 = vmor %vm105_vm14, %vm177_vm15  ;;  %vm176_vm14 = vcmp.eq.s32.totalorder %v1779_v36, %v1884_v54  ;;  %1230 = vperm.xlu0 %1573, %v1224_v3  }
  0x3a   :  { %vm1539_vm9 = vmpackc.low %vm217_vm5, %vm209_vm2 }
  0x3b   :  { %1540 = vmatprep.subr.msk.bf16.mxu1 %vm1539_vm9, %v1621_v35  ;;  %vm206_vm10 = vmor %vm94_vm3, %vm166_vm4 }
  0x3c   :  { %vm214_vm12 = vmor %vm102_vm6, %vm174_vm8 }
  0x3d   :  { %1483 = vmatmul.mubr.msk.bf16.gmra.mxu0 %vm390_vm7, %v2027_v6  ;;  %vm1520_vm15 = vmpackc.low %vm214_vm12, %vm206_vm10  ;;  %1235 = vperm.xlu0 %1573, %v1225_v9  }
  0x3e   :  { %524 = vmatprep.mubr.bf16.mxu0 %v1619_v7  ;;  %1521 = vmatpush1.bf16.msk.msra.mxu0 %vm1520_vm15, %v1621_v35  ;;  %vm208_vm1 = vmor %vm96_vm0, %vm168_vm11 }
  0x3f   :  { %vm216_vm2 = vmor %vm104_vm13, %vm176_vm14 }
  0x40   :  { %1504 = vmatmul.mubr.msk.bf16.gmra.mxu1 %vm390_vm7, %v2027_v6  ;;  %vm1541_vm3 = vmpackc.low %vm216_vm2, %vm208_vm1 }
  0x41   :  { %677 = vmatprep.mubr.bf16.mxu1 %v1619_v7  ;;  %1542 = vmatpush1.bf16.msk.msra.mxu1 %vm1541_vm3, %v1621_v35 }
  0x45   :  { %1484 = vmatmul.mubr.msk.bf16.gmra.mxu0 %vm390_vm7, %v2055_v8 }
  0x46   :  { %534 = vmatprep.mubr.bf16.mxu0 %v1619_v7 }
  0x48   :  { %1505 = vmatmul.mubr.msk.bf16.gmra.mxu1 %vm390_vm7, %v2055_v8 }
  0x49   :  { %687 = vmatprep.mubr.bf16.mxu1 %v1619_v7 }
  0x4d   :  { %1485 = vmatmul.mubr.msk.bf16.gmra.mxu0 %vm390_vm7, %v1580_v11 }
  0x4e   :  { %544 = vmatprep.mubr.bf16.mxu0 %v1619_v7 }
  0x50   :  { %1506 = vmatmul.mubr.msk.bf16.gmra.mxu1 %vm390_vm7, %v1580_v11 }
  0x51   :  { %697 = vmatprep.mubr.bf16.mxu1 %v1619_v7 }
  0x55   :  { %1486 = vmatmul.mubr.msk.bf16.gmra.mxu0 %vm390_vm7, %v1581_v13 }
  0x56   :  { %554 = vmatprep.mubr.bf16.mxu0 %v1619_v7 }
  0x58   :  { %1507 = vmatmul.mubr.msk.bf16.gmra.mxu1 %vm390_vm7, %v1581_v13 }
  0x59   :  { %707 = vmatprep.mubr.bf16.mxu1 %v1619_v7 }
  0x5d   :  { %1487 = vmatmul.mubr.msk.bf16.gmra.mxu0 %vm390_vm7, %v1582_v14 }
  0x5e   :  { %564 = vmatprep.mubr.bf16.mxu0 %v1619_v7 }
  0x60   :  { %1508 = vmatmul.mubr.msk.bf16.gmra.mxu1 %vm390_vm7, %v1582_v14 }
  0x61   :  { %717 = vmatprep.mubr.bf16.mxu1 %v1619_v7 }
  0x65   :  { %1488 = vmatmul.mubr.msk.bf16.gmra.mxu0 %vm390_vm7, %v1583_v15 }
  0x66   :  { %574 = vmatprep.mubr.bf16.mxu0 %v1619_v7 }
  0x68   :  { %1509 = vmatmul.mubr.msk.bf16.gmra.mxu1 %vm390_vm7, %v1583_v15 }
  0x69   :  { %727 = vmatprep.mubr.bf16.mxu1 %v1619_v7 }
  0x6d   :  { %1489 = vmatmul.mubr.msk.bf16.gmra.mxu0 %vm390_vm7, %v1584_v16 }
  0x6e   :  { %584 = vmatprep.mubr.bf16.mxu0 %v1619_v7 }
  0x70   :  { %1510 = vmatmul.mubr.msk.bf16.gmra.mxu1 %vm390_vm7, %v1584_v16 }
  0x71   :  { %737 = vmatprep.mubr.bf16.mxu1 %v1619_v7 }
  0x75   :  { %1490 = vmatmul.mubr.msk.bf16.gmra.mxu0 %vm390_vm7, %v1585_v17 }
  0x76   :  { %594 = vmatprep.mubr.bf16.mxu0 %v1619_v7 }
  0x78   :  { %1511 = vmatmul.mubr.msk.bf16.gmra.mxu1 %vm390_vm7, %v1585_v17 }
  0x79   :  { %747 = vmatprep.mubr.bf16.mxu1 %v1619_v7 }
  0x7d   :  { %1491 = vmatmul.mubr.msk.bf16.gmra.mxu0 %vm390_vm7, %v1586_v18 }
  0x7e   :  { %790 = vmatprep.mubr.bf16.mxu0 %v1619_v7 }
  0x80   :  { %1512 = vmatmul.mubr.msk.bf16.gmra.mxu1 %vm390_vm7, %v1586_v18 }
  0x81   :  { %943 = vmatprep.mubr.bf16.mxu1 %v1619_v7 }
  0x85   :  { %1522 = vmatmul.mubr.msk.bf16.vlgmr.msra.gmra.mxu0 %vm390_vm7, %v1878_v52 }
  0x86   :  { %800 = vmatprep.mubr.bf16.mxu0 %v1619_v7 }
  0x88   :  { %1543 = vmatmul.mubr.msk.bf16.vlgmr.msra.gmra.mxu1 %vm390_vm7, %v1878_v52 }
  0x89   :  { %953 = vmatprep.mubr.bf16.mxu1 %v1619_v7 }
  0x8d   :  { %1523 = vmatmul.mubr.msk.bf16.gmra.mxu0 %vm390_vm7, %v1929_v62 }
  0x8e   :  { %810 = vmatprep.mubr.bf16.mxu0 %v1619_v7 }
  0x90   :  { %1544 = vmatmul.mubr.msk.bf16.gmra.mxu1 %vm390_vm7, %v1929_v62 }
  0x91   :  { %963 = vmatprep.mubr.bf16.mxu1 %v1619_v7 }
  0x95   :  { %1524 = vmatmul.mubr.msk.bf16.gmra.mxu0 %vm390_vm7, %v1993_v5 }
  0x96   :  { %820 = vmatprep.mubr.bf16.mxu0 %v1619_v7 }
  0x98   :  { %1545 = vmatmul.mubr.msk.bf16.gmra.mxu1 %vm390_vm7, %v1993_v5 }
  0x99   :  { %973 = vmatprep.mubr.bf16.mxu1 %v1619_v7 }
  0x9d   :  { %1525 = vmatmul.mubr.msk.bf16.gmra.mxu0 %vm390_vm7, %v2027_v6 }
  0x9e   :  { %830 = vmatprep.mubr.bf16.mxu0 %v1619_v7 }
  0xa0   :  { %1546 = vmatmul.mubr.msk.bf16.gmra.mxu1 %vm390_vm7, %v2027_v6 }
  0xa1   :  { %983 = vmatprep.mubr.bf16.mxu1 %v1619_v7 }
  0xa5   :  { %1526 = vmatmul.mubr.msk.bf16.gmra.mxu0 %vm390_vm7, %v2055_v8 }
  0xa6   :  { %840 = vmatprep.mubr.bf16.mxu0 %v1619_v7 }
  0xa8   :  { %1547 = vmatmul.mubr.msk.bf16.gmra.mxu1 %vm390_vm7, %v2055_v8 }
  0xa9   :  { %993 = vmatprep.mubr.bf16.mxu1 %v1619_v7 }
  0xad   :  { %1527 = vmatmul.mubr.msk.bf16.gmra.mxu0 %vm390_vm7, %v1580_v11 }
  0xae   :  { %850 = vmatprep.mubr.bf16.mxu0 %v1619_v7 }
  0xb0   :  { %1548 = vmatmul.mubr.msk.bf16.gmra.mxu1 %vm390_vm7, %v1580_v11 }
  0xb1   :  { %1003 = vmatprep.mubr.bf16.mxu1 %v1619_v7 }
  0xb5   :  { %1528 = vmatmul.mubr.msk.bf16.gmra.mxu0 %vm390_vm7, %v1581_v13 }
  0xb6   :  { %860 = vmatprep.mubr.bf16.mxu0 %v1619_v7 }
  0xb8   :  { %1549 = vmatmul.mubr.msk.bf16.gmra.mxu1 %vm390_vm7, %v1581_v13 }
  0xb9   :  { %1013 = vmatprep.mubr.bf16.mxu1 %v1619_v7 }
  0xbd   :  { %1529 = vmatmul.mubr.msk.bf16.gmra.mxu0 %vm390_vm7, %v1582_v14 }
  0xbe   :  { %870 = vmatprep.mubr.bf16.mxu0 %v1619_v7 }
  0xc0   :  { %1550 = vmatmul.mubr.msk.bf16.gmra.mxu1 %vm390_vm7, %v1582_v14 }
  0xc1   :  { %1023 = vmatprep.mubr.bf16.mxu1 %v1619_v7 }
  0xc5   :  { %1530 = vmatmul.mubr.msk.bf16.gmra.mxu0 %vm390_vm7, %v1583_v15 }
  0xc6   :  { %880 = vmatprep.mubr.bf16.mxu0 %v1619_v7 }
  0xc8   :  { %1551 = vmatmul.mubr.msk.bf16.gmra.mxu1 %vm390_vm7, %v1583_v15 }
  0xc9   :  { %1033 = vmatprep.mubr.bf16.mxu1 %v1619_v7 }
  0xcd   :  { %1531 = vmatmul.mubr.msk.bf16.gmra.mxu0 %vm390_vm7, %v1584_v16 }
  0xce   :  { %890 = vmatprep.mubr.bf16.mxu0 %v1619_v7 }
  0xd0   :  { %1552 = vmatmul.mubr.msk.bf16.gmra.mxu1 %vm390_vm7, %v1584_v16 }
  0xd1   :  { %1043 = vmatprep.mubr.bf16.mxu1 %v1619_v7 }
  0xd5   :  { %1532 = vmatmul.mubr.msk.bf16.gmra.mxu0 %vm390_vm7, %v1585_v17 }
  0xd6   :  { %900 = vmatprep.mubr.bf16.mxu0 %v1619_v7 }
  0xd8   :  { %1553 = vmatmul.mubr.msk.bf16.gmra.mxu1 %vm390_vm7, %v1585_v17 }
  0xd9   :  { %1053 = vmatprep.mubr.bf16.mxu1 %v1619_v7 }
  0xdd   :  { %1533 = vmatmul.mubr.msk.bf16.gmra.mxu0 %vm390_vm7, %v1586_v18 }
  0xe0   :  { %1554 = vmatmul.mubr.msk.bf16.gmra.mxu1 %vm390_vm7, %v1586_v18 }
  0xe5   :  { %v486_v19 = vpop.f32.mrf.mxu0 }
  0xe7   :  { %v488_v20 = vpop.f32.mrf.mxu0 }
  0xe8   :  { %v639_v21 = vpop.f32.mrf.mxu1 }
  0xe9   :  { %v490_v22 = vpop.f32.mrf.mxu0 }
  0xea   :  { %v641_v23 = vpop.f32.mrf.mxu1 }
  0xeb   :  { %v492_v24 = vpop.f32.mrf.mxu0 }
  0xec   :  { %v643_v25 = vpop.f32.mrf.mxu1 }
  0xed   :  { %v496_v26 = vpop.f32.mrf.mxu0 }
  0xee   :  { %v645_v27 = vpop.f32.mrf.mxu1 }
  0xef   :  { %v498_v28 = vpop.f32.mrf.mxu0 }
  0xf0   :  { %v649_v29 = vpop.f32.mrf.mxu1 }
  0xf1   :  { %v2178_v30 = vpop.f32.mrf.mxu0 }
  0xf2   :  { %v651_v31 = vpop.f32.mrf.mxu1 }
  0xf3   :  { %v2180_v32 = vpop.f32.mrf.mxu0 }
  0xf4   :  { %v2182_v7 = vpop.f32.mrf.mxu1 }
  0xf5   :  { %v506_v33 = vpop.f32.mrf.mxu0 }
  0xf6   :  { %v2184_v34 = vpop.f32.mrf.mxu1  ;;  %v2186_v35 = vadd.f32 %v506_v33, %v486_v19 }
  0xf7   :  { %v508_v36 = vpop.f32.mrf.mxu0 }
  0xf8   :  { %v659_v37 = vpop.f32.mrf.mxu1  ;;  %v2188_v38 = vadd.f32 %v508_v36, %v488_v20 }
  0xf9   :  { %v2190_v39 = vadd.f32 %v659_v37, %v639_v21  ;;  %v510_v40 = vpop.f32.mrf.mxu0 }
  0xfa   :  { %v661_v41 = vpop.f32.mrf.mxu1  ;;  %v2192_v42 = vadd.f32 %v510_v40, %v490_v22 }
  0xfb   :  { %v2194_v43 = vadd.f32 %v661_v41, %v641_v23  ;;  %v512_v44 = vpop.f32.mrf.mxu0 }
  0xfc   :  { %v663_v45 = vpop.f32.mrf.mxu1  ;;  %v2196_v46 = vadd.f32 %v512_v44, %v492_v24 }
  0xfd   :  { %v2198_v47 = vadd.f32 %v663_v45, %v643_v25  ;;  %v516_v48 = vpop.f32.mrf.mxu0 }
  0xfe   :  { %v665_v49 = vpop.f32.mrf.mxu1  ;;  %v2200_v50 = vadd.f32 %v516_v48, %v496_v26 }
  0xff   :  { %2492 = vst [vmem:[#allocation3_spill] sm:$0xff] %v2198_v47  ;;  %v2202_v51 = vadd.f32 %v665_v49, %v645_v27  ;;  %v518_v52 = vpop.f32.mrf.mxu0 }
 0x100   :  { %2493 = vst [vmem:[#allocation4_spill] sm:$0xff] %v2200_v50  ;;  %v669_v53 = vpop.f32.mrf.mxu1  ;;  %v2204_v54 = vadd.f32 %v518_v52, %v498_v28 }
 0x101   :  { %2494 = vst [vmem:[#allocation5_spill] sm:$0xff] %v2202_v51  ;;  %v2206_v55 = vadd.f32 %v669_v53, %v649_v29  ;;  %v520_v56 = vpop.f32.mrf.mxu0 }
 0x102   :  { %2495 = vst [vmem:[#allocation6_spill] sm:$0xff] %v2204_v54  ;;  %v671_v57 = vpop.f32.mrf.mxu1 }
 0x103   :  { %2496 = vst [vmem:[#allocation7_spill] sm:$0xff] %v2206_v55  ;;  %v2208_v58 = vadd.f32 %v671_v57, %v651_v31  ;;  %v522_v59 = vpop.f32.mrf.mxu0 }
 0x104   :  { %v673_v60 = vpop.f32.mrf.mxu1 }
 0x105   :  { %2497 = vst [vmem:[#allocation8_spill] sm:$0xff] %v2208_v58  ;;  %v526_v61 = vpop.f32.mrf.mxu0 }
 0x106   :  { %v675_v62 = vpop.f32.mrf.mxu1  ;;  %v1096_v58 = vadd.f32 %v2186_v35, %v526_v61 }
 0x107   :  { %v528_v63 = vpop.f32.mrf.mxu0 }
 0x108   :  { %v679_v0 = vpop.f32.mrf.mxu1  ;;  %v1097_v54 = vadd.f32 %v2188_v38, %v528_v63  ;;  %v2238_v38 = vpop.permute.xlu0 %1230 }
 0x109   :  { %v530_v1 = vpop.f32.mrf.mxu0  ;;  %v1098_v55 = vadd.f32 %v2190_v39, %v679_v0  ;;  %v2507_v35 = vld [vmem:[#allocation6_spill] sm:$0xff] }
 0x10a   :  { %v681_v2 = vpop.f32.mrf.mxu1  ;;  %v1104_v47 = vadd.f32 %v2192_v42, %v530_v1  ;;  %v2509_v63 = vld [vmem:[#allocation7_spill] sm:$0xff] }
 0x10b   :  { %v532_v4 = vpop.f32.mrf.mxu0  ;;  %v1099_v51 = vadd.f32 %v2194_v43, %v681_v2 }
 0x10c   :  { %v683_v5 = vpop.f32.mrf.mxu1  ;;  %v2510_v2 = vld [vmem:[#allocation8_spill] sm:$0xff] }
 0x10d   :  { %v536_v6 = vpop.f32.mrf.mxu0 }
 0x10e   :  { %v685_v3 = vpop.f32.mrf.mxu1 }
 0x10f   :  { %v538_v8 = vpop.f32.mrf.mxu0 }
 0x110   :  { %v689_v9 = vpop.f32.mrf.mxu1  ;;  %v2236_v61 = vadd.f32 %v2507_v35, %v538_v8 }
 0x111   :  { %v540_v10 = vpop.f32.mrf.mxu0  ;;  %v2241_v43 = vadd.f32 %v2509_v63, %v689_v9 }
 0x112   :  { %v691_v11 = vpop.f32.mrf.mxu1 }
 0x113   :  { %v542_v12 = vpop.f32.mrf.mxu0 }
 0x114   :  { %v693_v13 = vpop.f32.mrf.mxu1 }
 0x115   :  { %v546_v14 = vpop.f32.mrf.mxu0 }
 0x116   :  { %v2210_v15 = vpop.f32.mrf.mxu1 }
 0x117   :  { %2498 = vst [vmem:[#allocation9_spill] sm:$0xff] %v2210_v15  ;;  %v548_v16 = vpop.f32.mrf.mxu0  ;;  %v1088_v15 = vadd.f32 %v520_v56, %v2178_v30  ;;  %v1105_v30 = vadd.f32 %v2196_v46, %v532_v4  ;;  %v2246_v4 = vadd.f32 %v2510_v2, %v691_v11 }
 0x118   :  { %v699_v17 = vpop.f32.mrf.mxu1 }
 0x119   :  { %v550_v18 = vpop.f32.mrf.mxu0  ;;  %v2243_v42 = vadd.f32 %v1088_v15, %v540_v10 }
 0x11a   :  { %v701_v19 = vpop.f32.mrf.mxu1 }
 0x11b   :  { %v552_v20 = vpop.f32.mrf.mxu0 }
 0x11c   :  { %v703_v21 = vpop.f32.mrf.mxu1 }
 0x11d   :  { %v556_v22 = vpop.f32.mrf.mxu0 }
 0x11e   :  { %v705_v23 = vpop.f32.mrf.mxu1 }
 0x11f   :  { %v558_v24 = vpop.f32.mrf.mxu0 }
 0x120   :  { %v709_v25 = vpop.f32.mrf.mxu1 }
 0x121   :  { %v560_v26 = vpop.f32.mrf.mxu0 }
 0x122   :  { %v2212_v27 = vpop.f32.mrf.mxu1 }
 0x123   :  { %2499 = vst [vmem:[#allocation10_spill] sm:$0xff] %v2212_v27  ;;  %v2214_v28 = vpop.f32.mrf.mxu0 }
 0x124   :  { %2500 = vst [vmem:[#allocation11_spill] sm:$0xff] %v2214_v28  ;;  %v2216_v29 = vpop.f32.mrf.mxu1  ;;  %v1090_v28 = vadd.f32 %v673_v60, %v2182_v7  ;;  %v2505_v60 = vld [vmem:[#allocation5_spill] sm:$0xff] }
 0x125   :  { %2501 = vst [vmem:[#allocation12_spill] sm:$0xff] %v2216_v29  ;;  %v566_v31 = vpop.f32.mrf.mxu0  ;;  %v1089_v29 = vadd.f32 %v522_v59, %v2180_v32  ;;  %v2504_v32 = vld [vmem:[#allocation3_spill] sm:$0xff] }
 0x126   :  { %v2218_v33 = vpop.f32.mrf.mxu1  ;;  %v1128_v7 = vadd.f32 %v566_v31, %v546_v14  ;;  %v1106_v59 = vadd.f32 %v2504_v32, %v683_v5  ;;  %2508 = vst [vmem:[#allocation3_spill] sm:$0xff] %v2238_v38  ;;  %v2248_v5 = vadd.f32 %v1090_v28, %v693_v13 }
 0x127   :  { %2502 = vst [vmem:[#allocation13_spill] sm:$0xff] %v2218_v33  ;;  %v568_v36 = vpop.f32.mrf.mxu0  ;;  %v2224_v33 = vadd.f32 %v675_v62, %v2184_v34  ;;  %v1107_v34 = vadd.f32 %v2505_v60, %v685_v3  ;;  %v2506_v62 = vld [vmem:[#allocation4_spill] sm:$0xff] }
 0x128   :  { %v719_v37 = vpop.f32.mrf.mxu1  ;;  %v1129_v46 = vadd.f32 %v568_v36, %v548_v16 }
 0x129   :  { %v570_v40 = vpop.f32.mrf.mxu0  ;;  %2503 = vst [vmem:[#allocation14_spill] sm:$0xff] %v2224_v33  ;;  %v1112_v33 = vadd.f32 %v2506_v62, %v536_v6  ;;  %v2250_v6 = vadd.f32 %v1089_v29, %v542_v12  ;;  %v1130_v3 = vadd.f32 %v719_v37, %v699_v17 }
 0x12a   :  { %v721_v41 = vpop.f32.mrf.mxu1  ;;  %v1136_v31 = vadd.f32 %v570_v40, %v550_v18  ;;  %v2512_v18 = vld [vmem:[#allocation10_spill] sm:$0xff] }
 0x12b   :  { %v572_v44 = vpop.f32.mrf.mxu0  ;;  %v1131_v14 = vadd.f32 %v721_v41, %v701_v19  ;;  %v2252_v19 = vpop.permute.xlu0 %1235  ;;  %v2513_v40 = vld [vmem:[#allocation11_spill] sm:$0xff] }
 0x12c   :  { %v723_v45 = vpop.f32.mrf.mxu1  ;;  %v1137_v32 = vadd.f32 %v572_v44, %v552_v20  ;;  %2511 = vst [vmem:[#allocation5_spill] sm:$0xff] %v2252_v19  ;;  %v2514_v44 = vld [vmem:[#allocation12_spill] sm:$0xff] }
 0x12d   :  { %v576_v48 = vpop.f32.mrf.mxu0  ;;  %v1138_v62 = vadd.f32 %v723_v45, %v703_v21 }
 0x12e   :  { %v725_v49 = vpop.f32.mrf.mxu1  ;;  %v1144_v15 = vadd.f32 %v576_v48, %v556_v22 }
 0x12f   :  { %v578_v52 = vpop.f32.mrf.mxu0  ;;  %v1139_v10 = vadd.f32 %v725_v49, %v705_v23 }
 0x130   :  { %v729_v53 = vpop.f32.mrf.mxu1  ;;  %v1145_v35 = vadd.f32 %v578_v52, %v558_v24  ;;  %v2515_v24 = vld [vmem:[#allocation13_spill] sm:$0xff] }
 0x131   :  { %v580_v57 = vpop.f32.mrf.mxu0 }
 0x132   :  { %v731_v27 = vpop.f32.mrf.mxu1  ;;  %v1152_v28 = vadd.f32 %v580_v57, %v560_v26 }
 0x133   :  { %v582_v50 = vpop.f32.mrf.mxu0  ;;  %v1147_v20 = vadd.f32 %v731_v27, %v2512_v18 }
 0x134   :  { %v733_v56 = vpop.f32.mrf.mxu1  ;;  %v1153_v21 = vadd.f32 %v582_v50, %v2513_v40 }
 0x135   :  { %v586_v39 = vpop.f32.mrf.mxu0 }
 0x136   :  { %v735_v0 = vpop.f32.mrf.mxu1  ;;  %v1160_v1 = vadd.f32 %v1128_v7, %v586_v39  ;;  %v1146_v7 = vadd.f32 %v729_v53, %v709_v25  ;;  %v1154_v25 = vadd.f32 %v733_v56, %v2514_v44 }
 0x137   :  { %v588_v8 = vpop.f32.mrf.mxu0 }
 0x138   :  { %v739_v60 = vpop.f32.mrf.mxu1  ;;  %v1161_v9 = vadd.f32 %v1129_v46, %v588_v8  ;;  %v1192_v11 = vmul.f32 %v1160_v1, %v1096_v58  ;;  %v1155_v58 = vadd.f32 %v735_v0, %v2515_v24 }
 0x139   :  { %v1162_v16 = vadd.f32 %v1130_v3, %v739_v60  ;;  %v590_v36 = vpop.f32.mrf.mxu0 }
 0x13a   :  { %v741_v39 = vpop.f32.mrf.mxu1  ;;  %v1168_v13 = vadd.f32 %v1136_v31, %v590_v36  ;;  %v1193_v29 = vmul.f32 %v1161_v9, %v1097_v54  ;;  %v1248_v52 = vmul.f32 %v2238_v38, %v1192_v11 }
 0x13b   :  { %v1194_v12 = vmul.f32 %v1162_v16, %v1098_v55  ;;  %v1163_v17 = vadd.f32 %v1131_v14, %v741_v39  ;;  %v592_v37 = vpop.f32.mrf.mxu0  ;;  %v2258_v55 = vpop.permute.xlu1 %1240 }
 0x13c   :  { %v1200_v23 = vmul.f32 %v1168_v13, %v1104_v47  ;;  %v743_v22 = vpop.f32.mrf.mxu1  ;;  %v1169_v41 = vadd.f32 %v1137_v32, %v592_v37  ;;  %2516 = vst [vmem:[#allocation4_spill] sm:$0xff] %v2258_v55  ;;  %v1249_v57 = vmul.f32 %v2238_v38, %v1193_v29  ;;  %v2518_v37 = vld [vmem:[#allocation9_spill] sm:$0xff] }
 0x13d   :  { %v1195_v45 = vmul.f32 %v1163_v17, %v1099_v51  ;;  %v1170_v48 = vadd.f32 %v1138_v62, %v743_v22  ;;  %v596_v26 = vpop.f32.mrf.mxu0  ;;  %v1250_v56 = vmul.f32 %v2238_v38, %v1194_v12 }
 0x13e   :  { %v1201_v54 = vmul.f32 %v1169_v41, %v1105_v30  ;;  %v745_v49 = vpop.f32.mrf.mxu1  ;;  %v1256_v27 = vmul.f32 %v2252_v19, %v1200_v23  ;;  %v1176_v53 = vadd.f32 %v1144_v15, %v596_v26 }
 0x13f   :  { %v1202_v50 = vmul.f32 %v1170_v48, %v1106_v59  ;;  %v1171_v47 = vadd.f32 %v1139_v10, %v745_v49  ;;  %v598_v63 = vpop.f32.mrf.mxu0  ;;  %v1251_v3 = vmul.f32 %v2238_v38, %v1195_v45  ;;  %v2271_v36 = vpop.permute.xlu1 %1245 }
 0x140   :  { %v1257_v51 = vmul.f32 %v2252_v19, %v1201_v54  ;;  %v1280_v46 = vadd.f32 %v1256_v27, %v1248_v52  ;;  %v1208_v0 = vmul.f32 %v1176_v53, %v1112_v33  ;;  %v749_v1 = vpop.f32.mrf.mxu1  ;;  %v1177_v2 = vadd.f32 %v1145_v35, %v598_v63  ;;  %2517 = vst [vmem:[#allocation6_spill] sm:$0xff] %v2271_v36 }
 0x141   :  { %v1203_v30 = vmul.f32 %v1171_v47, %v1107_v34  ;;  %v1258_v8 = vmul.f32 %v2252_v19, %v1202_v50  ;;  %v1178_v14 = vadd.f32 %v1146_v7, %v749_v1  ;;  %v600_v31 = vpop.f32.mrf.mxu0 }
 0x142   :  { %v1289_v59 = vadd.f32 %v1257_v51, %v1249_v57  ;;  %v1209_v32 = vmul.f32 %v1177_v2, %v2236_v61  ;;  %v751_v60 = vpop.f32.mrf.mxu1  ;;  %v1264_v9 = vmul.f32 %v2258_v55, %v1208_v0  ;;  %v1184_v62 = vadd.f32 %v1152_v28, %v600_v31 }
 0x143   :  { %v1259_v10 = vmul.f32 %v2252_v19, %v1203_v30  ;;  %v1298_v15 = vadd.f32 %v1258_v8, %v1250_v56  ;;  %v1210_v33 = vmul.f32 %v1178_v14, %v2241_v43  ;;  %v1179_v16 = vadd.f32 %v1147_v20, %v751_v60  ;;  %v602_v34 = vpop.f32.mrf.mxu0  ;;  %v2519_v43 = vld [vmem:[#allocation14_spill] sm:$0xff] }
 0x144   :  { %v1265_v35 = vmul.f32 %v2258_v55, %v1209_v32  ;;  %v1216_v7 = vmul.f32 %v1184_v62, %v2243_v42  ;;  %v753_v11 = vpop.f32.mrf.mxu1  ;;  %v1185_v39 = vadd.f32 %v1153_v21, %v602_v34  ;;  %v1281_v61 = vadd.f32 %v1280_v46, %v1264_v9 }
 0x145   :  { %v1307_v13 = vadd.f32 %v1259_v10, %v1251_v3  ;;  %v1211_v12 = vmul.f32 %v1179_v16, %v2246_v4  ;;  %v1266_v28 = vmul.f32 %v2258_v55, %v1210_v33  ;;  %v1186_v29 = vadd.f32 %v1154_v25, %v753_v11  ;;  %v792_v17 = vpop.f32.mrf.mxu0 }
 0x146   :  { %v1123_v18 = vadd.f32 %v2519_v43, %v2518_v37  ;;  %v1217_v20 = vmul.f32 %v1185_v39, %v2250_v6  ;;  %v755_v40 = vpop.f32.mrf.mxu1  ;;  %v1272_v23 = vmul.f32 %v2271_v36, %v1216_v7  ;;  %v1290_v22 = vadd.f32 %v1289_v59, %v1265_v35 }
 0x147   :  { %v1267_v42 = vmul.f32 %v2258_v55, %v1211_v12  ;;  %v1218_v21 = vmul.f32 %v1186_v29, %v2248_v5  ;;  %v1187_v41 = vadd.f32 %v1155_v58, %v755_v40  ;;  %v1299_v44 = vadd.f32 %v1298_v15, %v1266_v28  ;;  %v794_v4 = vpop.f32.mrf.mxu0 }
 0x148   :  { %v1273_v24 = vmul.f32 %v2271_v36, %v1217_v20  ;;  %v1282_v25 = vadd.f32 %v1281_v61, %v1272_v23  ;;  %v945_v45 = vpop.f32.mrf.mxu1  ;;  %v2291_v15 = vstv %s2472_s4 }
 0x149   :  { %v1219_v48 = vmul.f32 %v1187_v41, %v1123_v18  ;;  %v1274_v26 = vmul.f32 %v2271_v36, %v1218_v21  ;;  %v1308_v54 = vadd.f32 %v1307_v13, %v1267_v42  ;;  %v796_v6 = vpop.f32.mrf.mxu0  ;;  %2520 = vst [vmem:[#allocation7_spill] sm:$0xff] %v2291_v15 }
 0x14a   :  { %v1283_v49 = vrot.slane %v1282_v25, 4  ;;  %v1291_v52 = vadd.f32 %v1290_v22, %v1273_v24  ;;  %v947_v27 = vpop.f32.mrf.mxu1 }
 0x14b   :  { %v1275_v53 = vmul.f32 %v2271_v36, %v1219_v48  ;;  %v1300_v50 = vadd.f32 %v1299_v44, %v1274_v26  ;;  %v798_v47 = vpop.f32.mrf.mxu0 }
 0x14c   :  { %v1284_v5 = vadd.f32 %v1283_v49, %v1282_v25  ;;  %v1292_v58 = vrot.slane %v1291_v52, 4  ;;  %v949_v57 = vpop.f32.mrf.mxu1 }
 0x14d   :  { %v1301_v56 = vrot.slane %v1300_v50, 4  ;;  %v1309_v63 = vadd.f32 %v1308_v54, %v1275_v53  ;;  %v802_v51 = vpop.f32.mrf.mxu0 }
 0x14e   :  { %v1285_v46 = vrot.slane %v1284_v5, 2  ;;  %v1293_v0 = vadd.f32 %v1292_v58, %v1291_v52  ;;  %v951_v1 = vpop.f32.mrf.mxu1 }
 0x14f   :  { %v1302_v2 = vadd.f32 %v1301_v56, %v1300_v50  ;;  %v1310_v30 = vrot.slane %v1309_v63, 4  ;;  %v804_v3 = vpop.f32.mrf.mxu0 }
 0x150   :  { %v1286_v8 = vadd.f32 %v1285_v46, %v1284_v5  ;;  %v1294_v14 = vrot.slane %v1293_v0, 2  ;;  %v955_v31 = vpop.f32.mrf.mxu1 }
 0x151   :  { %v1303_v59 = vrot.slane %v1302_v2, 2  ;;  %v1311_v32 = vadd.f32 %v1310_v30, %v1309_v63  ;;  %v2286_v60 = vpop.f32.mrf.mxu0 }
 0x152   :  { %v1287_v9 = vrot.slane %v1286_v8, 1  ;;  %v1295_v62 = vadd.f32 %v1294_v14, %v1293_v0  ;;  %v957_v10 = vpop.f32.mrf.mxu1 }
 0x153   :  { %v1304_v33 = vadd.f32 %v1303_v59, %v1302_v2  ;;  %v1312_v16 = vrot.slane %v1311_v32, 2  ;;  %v2293_v34 = vpop.f32.mrf.mxu0 }
 0x154   :  { %v1288_v35 = vadd.f32 %v1287_v9, %v1286_v8  ;;  %v1296_v7 = vrot.slane %v1295_v62, 1  ;;  %v2295_v11 = vpop.f32.mrf.mxu1 }
 0x155   :  { %v1305_v39 = vrot.slane %v1304_v33, 1  ;;  %v1313_v61 = vadd.f32 %v1312_v16, %v1311_v32  ;;  %v812_v13 = vpop.f32.mrf.mxu0 }
 0x156   :  { %v1297_v12 = vadd.f32 %v1296_v7, %v1295_v62  ;;  %v1354_v28 = vadd.f32 %v2291_v15, %v1288_v35  ;;  %v2298_v29 = vpop.f32.mrf.mxu1  ;;  %v2300_v37 = vadd.f32 %v812_v13, %v792_v17 }
 0x157   :  { %v1306_v43 = vadd.f32 %v1305_v39, %v1304_v33  ;;  %v1314_v18 = vrot.slane %v1313_v61, 1  ;;  %v814_v20 = vpop.f32.mrf.mxu0 }
 0x158   :  { %v1355_v40 = vadd.f32 %v2291_v15, %v1297_v12  ;;  %v1555_v23 = vmul.f32 -1.442695, %v1354_v28  ;;  %v965_v22 = vpop.f32.mrf.mxu1  ;;  %v2303_v42 = vadd.f32 %v814_v20, %v794_v4 }
 0x159   :  { %v1315_v21 = vadd.f32 %v1314_v18, %v1313_v61  ;;  %v1356_v41 = vadd.f32 %v2291_v15, %v1306_v43  ;;  %v2306_v44 = vadd.f32 %v965_v22, %v945_v45  ;;  %v816_v24 = vpop.f32.mrf.mxu0 }
 0x15a   :  { %1587 = vpow2.f32 %v1555_v23  ;;  %v1556_v25 = vmul.f32 -1.442695, %v1355_v40  ;;  %v967_v48 = vpop.f32.mrf.mxu1  ;;  %v2308_v17 = vadd.f32 %v816_v24, %v796_v6 }
 0x15b   :  { %v1357_v26 = vadd.f32 %v2291_v15, %v1315_v21  ;;  %v1557_v54 = vmul.f32 -1.442695, %v1356_v41  ;;  %v2311_v49 = vadd.f32 %v967_v48, %v947_v27  ;;  %v818_v52 = vpop.f32.mrf.mxu0 }
 0x15c   :  { %1589 = vpow2.f32 %v1556_v25  ;;  %v969_v4 = vpop.f32.mrf.mxu1  ;;  %v2313_v53 = vadd.f32 %v818_v52, %v798_v47 }
 0x15d   :  { %1591 = vpow2.f32 %v1557_v54  ;;  %v1558_v50 = vmul.f32 -1.442695, %v1357_v26  ;;  %v2315_v45 = vadd.f32 %v969_v4, %v949_v57  ;;  %v822_v5 = vpop.f32.mrf.mxu0 }
 0x15e   :  { %v971_v58 = vpop.f32.mrf.mxu1  ;;  %v2317_v56 = vadd.f32 %v822_v5, %v802_v51 }
 0x15f   :  { %1593 = vpow2.f32 %v1558_v50  ;;  %v2319_v6 = vadd.f32 %v971_v58, %v951_v1  ;;  %v824_v63 = vpop.f32.mrf.mxu0 }
 0x160   :  { %v975_v46 = vpop.f32.mrf.mxu1  ;;  %v2321_v27 = vadd.f32 %v824_v63, %v804_v3 }
 0x161   :  { %v2323_v0 = vadd.f32 %v975_v46, %v955_v31  ;;  %v2325_v2 = vpop.f32.mrf.mxu0 }
 0x162   :  { %v977_v47 = vpop.f32.mrf.mxu1  ;;  %v1092_v38 = vadd.f32 %v2325_v2, %v2286_v60 }
 0x163   :  { %v2327_v30 = vadd.f32 %v977_v47, %v957_v10  ;;  %v2329_v57 = vpop.f32.mrf.mxu0 }
 0x164   :  { %v2331_v8 = vpop.f32.mrf.mxu1 }
 0x165   :  { %v2333_v51 = vpop.f32.mrf.mxu0 }
 0x166   :  { %v2335_v14 = vpop.f32.mrf.mxu1 }
 0x167   :  { %v1588_v1 = vpop.eup %1587  ;;  %v2337_v59 = vpop.f32.mrf.mxu0 }
 0x168   :  { %v1386_v3 = vadd.f32 1.0, %v1588_v1  ;;  %v2339_v32 = vpop.f32.mrf.mxu1  ;;  %v1101_v60 = vadd.f32 %v2303_v42, %v2337_v59 }
 0x169   :  { %v1590_v31 = vpop.eup %1589  ;;  %v2341_v9 = vpop.f32.mrf.mxu0 }
 0x16a   :  { %v1592_v62 = vpop.eup %1591  ;;  %v1387_v10 = vadd.f32 1.0, %v1590_v31  ;;  %1595 = vrcp.f32 %v1386_v3  ;;  %v2343_v33 = vpop.f32.mrf.mxu1 }
 0x16b   :  { %v1388_v16 = vadd.f32 1.0, %v1592_v62  ;;  %v2345_v35 = vpop.f32.mrf.mxu0 }
 0x16c   :  { %v1594_v7 = vpop.eup %1593  ;;  %1597 = vrcp.f32 %v1387_v10  ;;  %v2347_v39 = vpop.f32.mrf.mxu1 }
 0x16d   :  { %v1389_v61 = vadd.f32 1.0, %v1594_v7  ;;  %1599 = vrcp.f32 %v1388_v16  ;;  %v2349_v13 = vpop.f32.mrf.mxu0 }
 0x16e   :  { %v991_v12 = vpop.f32.mrf.mxu1  ;;  %v1116_v42 = vadd.f32 %v2317_v56, %v2349_v13 }
 0x16f   :  { %1601 = vrcp.f32 %v1389_v61  ;;  %v844_v28 = vpop.f32.mrf.mxu0 }
 0x170   :  { %v995_v43 = vpop.f32.mrf.mxu1 }
 0x171   :  { %v846_v18 = vpop.f32.mrf.mxu0 }
 0x172   :  { %v2351_v20 = vpop.f32.mrf.mxu1 }
 0x173   :  { %v2353_v40 = vpop.f32.mrf.mxu0 }
 0x174   :  { %2521 = vst [vmem:[#allocation8_spill] sm:$0xff] %v2353_v40  ;;  %v2355_v23 = vpop.f32.mrf.mxu1  ;;  %v1100_v40 = vadd.f32 %v2300_v37, %v2333_v51  ;;  %v1110_v37 = vadd.f32 %v2315_v45, %v2347_v39  ;;  %v2407_v51 = vadd.f32 %v2321_v27, %v844_v28  ;;  %v2416_v45 = vadd.f32 %v2327_v30, %v2351_v20 }
 0x175   :  { %2522 = vst [vmem:[#allocation10_spill] sm:$0xff] %v2355_v23  ;;  %v852_v22 = vpop.f32.mrf.mxu0  ;;  %v1102_v23 = vadd.f32 %v2306_v44, %v2339_v32  ;;  %v1111_v44 = vadd.f32 %v2319_v6, %v991_v12 }
 0x176   :  { %v2357_v21 = vpop.f32.mrf.mxu1 }
 0x177   :  { %2523 = vst [vmem:[#allocation11_spill] sm:$0xff] %v2357_v21  ;;  %v1596_v41 = vpop.eup %1595  ;;  %v854_v24 = vpop.f32.mrf.mxu0 }
 0x178   :  { %1411 = vst [vmem:[%s2473_s5] ss:$8 sm:$0x1] %v1596_v41  ;;  %v1005_v25 = vpop.f32.mrf.mxu1 }
 0x179   :  { %v1598_v48 = vpop.eup %1597  ;;  %v856_v26 = vpop.f32.mrf.mxu0 }
 0x17a   :  { %v1600_v54 = vpop.eup %1599  ;;  %1563 = vst [vmem:[%s2473_s5 + $0x1] ss:$8 sm:$0x1] %v1598_v48  ;;  %v1007_v52 = vpop.f32.mrf.mxu1 }
 0x17b   :  { %1564 = vst [vmem:[%s2473_s5 + $0x2] ss:$8 sm:$0x1] %v1600_v54  ;;  %v858_v4 = vpop.f32.mrf.mxu0  ;;  %v2529_v56 = vld [vmem:[#allocation8_spill] sm:$0xff] }
 0x17c   :  { %v1602_v50 = vpop.eup %1601  ;;  %v1009_v5 = vpop.f32.mrf.mxu1  ;;  %v2528_v6 = vld [vmem:[#allocation10_spill] sm:$0xff] }
 0x17d   :  { %1565 = vst [vmem:[%s2473_s5 + $0x3] ss:$8 sm:$0x1] %v1602_v50  ;;  %v862_v58 = vpop.f32.mrf.mxu0 }
 0x17e   :  { %v1011_v63 = vpop.f32.mrf.mxu1 }
 0x17f   :  { %v864_v46 = vpop.f32.mrf.mxu0 }
 0x180   :  { %v1015_v47 = vpop.f32.mrf.mxu1 }
 0x181   :  { %v866_v1 = vpop.f32.mrf.mxu0 }
 0x182   :  { %v2371_v3 = vpop.f32.mrf.mxu1 }
 0x183   :  { %2524 = vst [vmem:[#allocation12_spill] sm:$0xff] %v2371_v3  ;;  %v2373_v31 = vpop.f32.mrf.mxu0  ;;  %v2387_v3 = vadd.f32 %v2335_v14, %v2298_v29  ;;  %v1109_v29 = vadd.f32 %v2313_v53, %v2345_v35  ;;  %v2410_v14 = vadd.f32 %v2323_v0, %v995_v43 }
 0x184   :  { %2525 = vst [vmem:[#allocation13_spill] sm:$0xff] %v2373_v31  ;;  %v2375_v62 = vpop.f32.mrf.mxu1 }
 0x185   :  { %2526 = vst [vmem:[#allocation9_spill] sm:$0xff] %v2375_v62  ;;  %v872_v10 = vpop.f32.mrf.mxu0  ;;  %v1094_v62 = vadd.f32 %v2331_v8, %v2295_v11  ;;  %v1103_v11 = vadd.f32 %v2311_v49, %v2343_v33 }
 0x186   :  { %v2377_v16 = vpop.f32.mrf.mxu1 }
 0x187   :  { %2527 = vst [vmem:[#allocation14_spill] sm:$0xff] %v2377_v16  ;;  %v874_v7 = vpop.f32.mrf.mxu0  ;;  %v1093_v16 = vadd.f32 %v2329_v57, %v2293_v34  ;;  %v1108_v34 = vadd.f32 %v2308_v17, %v2341_v9  ;;  %v1132_v57 = vadd.f32 %v872_v10, %v852_v22  ;;  %v2412_v17 = vadd.f32 %v1092_v38, %v846_v18 }
 0x188   :  { %v1025_v61 = vpop.f32.mrf.mxu1  ;;  %v1133_v53 = vadd.f32 %v874_v7, %v854_v24  ;;  %v2419_v9 = vadd.f32 %v1094_v62, %v2528_v6 }
 0x189   :  { %v876_v41 = vpop.f32.mrf.mxu0  ;;  %v2422_v33 = vadd.f32 %v1093_v16, %v2529_v56  ;;  %v1134_v27 = vadd.f32 %v1025_v61, %v1005_v25 }
 0x18a   :  { %v1027_v48 = vpop.f32.mrf.mxu1  ;;  %v1140_v0 = vadd.f32 %v876_v41, %v856_v26 }
 0x18b   :  { %v878_v54 = vpop.f32.mrf.mxu0  ;;  %v1135_v39 = vadd.f32 %v1027_v48, %v1007_v52  ;;  %v2530_v52 = vld [vmem:[#allocation12_spill] sm:$0xff] }
 0x18c   :  { %v1029_v50 = vpop.f32.mrf.mxu1  ;;  %v1141_v13 = vadd.f32 %v878_v54, %v858_v4  ;;  %v2531_v4 = vld [vmem:[#allocation13_spill] sm:$0xff] }
 0x18d   :  { %v882_v15 = vpop.f32.mrf.mxu0  ;;  %v1142_v28 = vadd.f32 %v1029_v50, %v1009_v5 }
 0x18e   :  { %v1031_v36 = vpop.f32.mrf.mxu1  ;;  %v1148_v18 = vadd.f32 %v882_v15, %v862_v58  ;;  %v2532_v15 = vld [vmem:[#allocation9_spill] sm:$0xff] }
 0x18f   :  { %v884_v21 = vpop.f32.mrf.mxu0  ;;  %v1143_v43 = vadd.f32 %v1031_v36, %v1011_v63  ;;  %v2533_v63 = vld [vmem:[#allocation14_spill] sm:$0xff] }
 0x190   :  { %v1035_v55 = vpop.f32.mrf.mxu1  ;;  %v1149_v20 = vadd.f32 %v884_v21, %v864_v46 }
 0x191   :  { %v886_v19 = vpop.f32.mrf.mxu0  ;;  %v1150_v30 = vadd.f32 %v1035_v55, %v1015_v47  ;;  %v2534_v47 = vld [vmem:[#allocation3_spill] sm:$0xff] }
 0x192   :  { %v1037_v31 = vpop.f32.mrf.mxu1 }
 0x193   :  { %v888_v2 = vpop.f32.mrf.mxu0  ;;  %v1151_v26 = vadd.f32 %v1037_v31, %v2530_v52 }
 0x194   :  { %v1039_v8 = vpop.f32.mrf.mxu1  ;;  %v1157_v41 = vadd.f32 %v888_v2, %v2531_v4 }
 0x195   :  { %v892_v49 = vpop.f32.mrf.mxu0  ;;  %v1158_v58 = vadd.f32 %v1039_v8, %v2532_v15 }
 0x196   :  { %v1041_v59 = vpop.f32.mrf.mxu1  ;;  %v1164_v32 = vadd.f32 %v1132_v57, %v892_v49  ;;  %v1156_v57 = vadd.f32 %v886_v19, %v866_v1 }
 0x197   :  { %v894_v35 = vpop.f32.mrf.mxu0  ;;  %v1159_v55 = vadd.f32 %v1041_v59, %v2533_v63 }
 0x198   :  { %v1045_v38 = vpop.f32.mrf.mxu1  ;;  %v1165_v12 = vadd.f32 %v1133_v53, %v894_v35  ;;  %v1196_v10 = vmul.f32 %v1164_v32, %v1100_v40 }
 0x199   :  { %v1166_v22 = vadd.f32 %v1134_v27, %v1045_v38  ;;  %v896_v24 = vpop.f32.mrf.mxu0  ;;  %v2536_v38 = vld [vmem:[#allocation4_spill] sm:$0xff] }
 0x19a   :  { %v1047_v62 = vpop.f32.mrf.mxu1  ;;  %v1172_v7 = vadd.f32 %v1140_v0, %v896_v24  ;;  %v1197_v49 = vmul.f32 %v1165_v12, %v1101_v60  ;;  %v1252_v19 = vmul.f32 %v2534_v47, %v1196_v10 }
 0x19b   :  { %v1198_v16 = vmul.f32 %v1166_v22, %v1102_v23  ;;  %v1167_v25 = vadd.f32 %v1135_v39, %v1047_v62  ;;  %v898_v61 = vpop.f32.mrf.mxu0  ;;  %v2535_v23 = vld [vmem:[#allocation5_spill] sm:$0xff] }
 0x19c   :  { %v1204_v48 = vmul.f32 %v1172_v7, %v1108_v34  ;;  %v1049_v5 = vpop.f32.mrf.mxu1  ;;  %v1173_v36 = vadd.f32 %v1141_v13, %v898_v61  ;;  %v1253_v2 = vmul.f32 %v2534_v47, %v1197_v49 }
 0x19d   :  { %v1199_v21 = vmul.f32 %v1167_v25, %v1103_v11  ;;  %v1174_v40 = vadd.f32 %v1142_v28, %v1049_v5  ;;  %v902_v46 = vpop.f32.mrf.mxu0  ;;  %v1254_v31 = vmul.f32 %v2534_v47, %v1198_v16  ;;  %v2537_v25 = vld [vmem:[#allocation11_spill] sm:$0xff] }
 0x19e   :  { %v1260_v1 = vmul.f32 %v2535_v23, %v1204_v48  ;;  %v1205_v54 = vmul.f32 %v1173_v36, %v1109_v29  ;;  %v1051_v50 = vpop.f32.mrf.mxu1  ;;  %v1180_v60 = vadd.f32 %v1148_v18, %v902_v46  ;;  %v1127_v61 = vadd.f32 %v2387_v3, %v2537_v25 }
 0x19f   :  { %v1206_v34 = vmul.f32 %v1174_v40, %v1110_v37  ;;  %v1175_v53 = vadd.f32 %v1143_v43, %v1051_v50  ;;  %v904_v32 = vpop.f32.mrf.mxu0  ;;  %v1255_v27 = vmul.f32 %v2534_v47, %v1199_v21 }
 0x1a0   :  { %v1316_v8 = vadd.f32 %v1260_v1, %v1252_v19  ;;  %v1261_v59 = vmul.f32 %v2535_v23, %v1205_v54  ;;  %v1212_v11 = vmul.f32 %v1180_v60, %v1116_v42  ;;  %v1055_v6 = vpop.f32.mrf.mxu1  ;;  %v1181_v56 = vadd.f32 %v1149_v20, %v904_v32 }
 0x1a1   :  { %v1262_v35 = vmul.f32 %v2535_v23, %v1206_v34  ;;  %v1207_v29 = vmul.f32 %v1175_v53, %v1111_v44  ;;  %v1182_v39 = vadd.f32 %v1150_v30, %v1055_v6  ;;  %v906_v0 = vpop.f32.mrf.mxu0 }
 0x1a2   :  { %v1325_v13 = vadd.f32 %v1261_v59, %v1253_v2  ;;  %v1268_v12 = vmul.f32 %v2536_v38, %v1212_v11  ;;  %v1213_v37 = vmul.f32 %v1181_v56, %v2407_v51  ;;  %v1057_v28 = vpop.f32.mrf.mxu1  ;;  %v1188_v43 = vadd.f32 %v1156_v57, %v906_v0 }
 0x1a3   :  { %v1334_v18 = vadd.f32 %v1262_v35, %v1254_v31  ;;  %v1263_v22 = vmul.f32 %v2535_v23, %v1207_v29  ;;  %v1214_v42 = vmul.f32 %v1182_v39, %v2410_v14  ;;  %v1183_v24 = vadd.f32 %v1151_v26, %v1057_v28  ;;  %v908_v20 = vpop.f32.mrf.mxu0  ;;  %v2538_v14 = vld [vmem:[#allocation6_spill] sm:$0xff]  ;;  %v2539_v35 = vld [vmem:[#allocation7_spill] sm:$0xff] }
 0x1a4   :  { %v1317_v10 = vadd.f32 %v1316_v8, %v1268_v12  ;;  %v1269_v62 = vmul.f32 %v2536_v38, %v1213_v37  ;;  %v1220_v44 = vmul.f32 %v1188_v43, %v2412_v17  ;;  %v1059_v30 = vpop.f32.mrf.mxu1  ;;  %v1189_v7 = vadd.f32 %v1157_v41, %v908_v20 }
 0x1a5   :  { %v1343_v16 = vadd.f32 %v1263_v22, %v1255_v27  ;;  %v1270_v49 = vmul.f32 %v2536_v38, %v1214_v42  ;;  %v1215_v51 = vmul.f32 %v1183_v24, %v2416_v45  ;;  %v1190_v57 = vadd.f32 %v1158_v58, %v1059_v30 }
 0x1a6   :  { %v1326_v52 = vadd.f32 %v1325_v13, %v1269_v62  ;;  %v1276_v26 = vmul.f32 %v2538_v14, %v1220_v44  ;;  %v1221_v4 = vmul.f32 %v1189_v7, %v2422_v33  ;;  %v1061_v48 = vpop.f32.mrf.mxu1 }
 0x1a7   :  { %v1335_v5 = vadd.f32 %v1334_v18, %v1270_v49  ;;  %v1271_v17 = vmul.f32 %v2536_v38, %v1215_v51  ;;  %v1222_v41 = vmul.f32 %v1190_v57, %v2419_v9  ;;  %v1191_v36 = vadd.f32 %v1159_v55, %v1061_v48 }
 0x1a8   :  { %v1318_v15 = vadd.f32 %v1317_v10, %v1276_v26  ;;  %v1277_v63 = vmul.f32 %v2538_v14, %v1221_v4 }
 0x1a9   :  { %v1344_v45 = vadd.f32 %v1343_v16, %v1271_v17  ;;  %v1278_v58 = vmul.f32 %v2538_v14, %v1222_v41  ;;  %v1223_v21 = vmul.f32 %v1191_v36, %v1127_v61 }
 0x1aa   :  { %v1319_v3 = vrot.slane %v1318_v15, 4  ;;  %v1327_v40 = vadd.f32 %v1326_v52, %v1277_v63 }
 0x1ab   :  { %v1336_v46 = vadd.f32 %v1335_v5, %v1278_v58  ;;  %v1279_v47 = vmul.f32 %v2538_v14, %v1223_v21 }
 0x1ac   :  { %v1320_v33 = vadd.f32 %v1319_v3, %v1318_v15  ;;  %v1328_v19 = vrot.slane %v1327_v40, 4 }
 0x1ad   :  { %v1337_v23 = vrot.slane %v1336_v46, 4  ;;  %v1345_v1 = vadd.f32 %v1344_v45, %v1279_v47 }
 0x1ae   :  { %v1321_v54 = vrot.slane %v1320_v33, 2  ;;  %v1329_v50 = vadd.f32 %v1328_v19, %v1327_v40 }
 0x1af   :  { %v1338_v9 = vadd.f32 %v1337_v23, %v1336_v46  ;;  %v1346_v55 = vrot.slane %v1345_v1, 4 }
 0x1b0   :  { %v1322_v60 = vadd.f32 %v1321_v54, %v1320_v33  ;;  %v1330_v31 = vrot.slane %v1329_v50, 2 }
 0x1b1   :  { %v1339_v2 = vrot.slane %v1338_v9, 2  ;;  %v1347_v34 = vadd.f32 %v1346_v55, %v1345_v1 }
 0x1b2   :  { %v1323_v53 = vrot.slane %v1322_v60, 1  ;;  %v1331_v32 = vadd.f32 %v1330_v31, %v1329_v50 }
 0x1b3   :  { %v1340_v8 = vadd.f32 %v1339_v2, %v1338_v9  ;;  %v1348_v59 = vrot.slane %v1347_v34, 2 }
 0x1b4   :  { %v1324_v11 = vadd.f32 %v1323_v53, %v1322_v60  ;;  %v1332_v6 = vrot.slane %v1331_v32, 1 }
 0x1b5   :  { %v1341_v56 = vrot.slane %v1340_v8, 1  ;;  %v1349_v27 = vadd.f32 %v1348_v59, %v1347_v34 }
 0x1b6   :  { %v1358_v29 = vadd.f32 %v2539_v35, %v1324_v11  ;;  %v1333_v39 = vadd.f32 %v1332_v6, %v1331_v32 }
 0x1b7   :  { %v1342_v0 = vadd.f32 %v1341_v56, %v1340_v8  ;;  %v1350_v13 = vrot.slane %v1349_v27, 1 }
 0x1b8   :  { %v1559_v38 = vmul.f32 -1.442695, %v1358_v29  ;;  %v1359_v12 = vadd.f32 %v2539_v35, %v1333_v39 }
 0x1b9   :  { %v1360_v37 = vadd.f32 %v2539_v35, %v1342_v0  ;;  %v1351_v28 = vadd.f32 %v1350_v13, %v1349_v27 }
 0x1ba   :  { %1603 = vpow2.f32 %v1559_v38  ;;  %v1560_v43 = vmul.f32 -1.442695, %v1359_v12 }
 0x1bb   :  { %v1561_v18 = vmul.f32 -1.442695, %v1360_v37  ;;  %v1361_v22 = vadd.f32 %v2539_v35, %v1351_v28 }
 0x1bc   :  { %1605 = vpow2.f32 %v1560_v43 }
 0x1bd   :  { %1607 = vpow2.f32 %v1561_v18  ;;  %v1562_v42 = vmul.f32 -1.442695, %v1361_v22 }
 0x1bf   :  { %1609 = vpow2.f32 %v1562_v42 }
 0x1c7   :  { %v1604_v24 = vpop.eup %1603 }
 0x1c8   :  { %v1390_v20 = vadd.f32 1.0, %v1604_v24 }
 0x1c9   :  { %v1606_v10 = vpop.eup %1605 }
 0x1ca   :  { %v1608_v62 = vpop.eup %1607  ;;  %1611 = vrcp.f32 %v1390_v20  ;;  %v1391_v44 = vadd.f32 1.0, %v1606_v10 }
 0x1cb   :  { %v1392_v30 = vadd.f32 1.0, %v1608_v62 }
 0x1cc   :  { %v1610_v7 = vpop.eup %1609  ;;  %1613 = vrcp.f32 %v1391_v44 }
 0x1cd   :  { %1615 = vrcp.f32 %v1392_v30  ;;  %v1393_v16 = vadd.f32 1.0, %v1610_v7 }
 0x1cf   :  { %1617 = vrcp.f32 %v1393_v16 }
 0x1d7   :  { %v1612_v49 = vpop.eup %1611 }
 0x1d8   :  { %1566 = vst [vmem:[%s2473_s5 + $0x4] ss:$8 sm:$0x1] %v1612_v49 }
 0x1d9   :  { %v1614_v51 = vpop.eup %1613 }
 0x1da   :  { %v1616_v57 = vpop.eup %1615  ;;  %1567 = vst [vmem:[%s2473_s5 + $0x5] ss:$8 sm:$0x1] %v1614_v51 }
 0x1db   :  { %1568 = vst [vmem:[%s2473_s5 + $0x6] ss:$8 sm:$0x1] %v1616_v57 }
 0x1dc   :  { %v1618_v25 = vpop.eup %1617 }
 0x1dd   :  { %1569 = vst [vmem:[%s2473_s5 + $0x7] ss:$8 sm:$0x1] %v1618_v25 }

</bundles_post_ra>
